<compile_context>
chip_gen: v7x
topology: tpu7x:2x2x1
jax: 0.10.0
libtpu: 0.0.40
codegen_flags: <defaults>
</compile_context>

<pallas_src>
import functools

import jax
import jax.numpy as jnp
from jax.experimental import pallas as pl
from jax.experimental.pallas import tpu as pltpu

K_IN = 784        # logical input features (28*28)
H1 = 256
H2 = 128
N_OUT = 10        # logical logits
N_PAD = 128       # lane-dense output tile
TB_MAX = 2048     # max batch tile (fits comfortably under the scoped-VMEM limit below)
TB_GRAN = 128     # batch-tile granularity (sublane/MXU friendly, small-batch friendly)


def mlp_kernel(x_ref, w1_ref, b1_ref, w2_ref, b2_ref, w3_ref, b3_ref, o_ref):
    # x arrives as f32 straight from HBM (single HBM read, no wrapper cast/pad pass);
    # cast once in VMEM so all matmuls run bf16 on the MXU with f32 accumulation.
    x = x_ref[...].astype(jnp.bfloat16)
    h1 = jnp.dot(x, w1_ref[...], preferred_element_type=jnp.float32) + b1_ref[...]
    h1 = jnp.maximum(h1, 0.0).astype(jnp.bfloat16)
    h2 = jnp.dot(h1, w2_ref[...], preferred_element_type=jnp.float32) + b2_ref[...]
    h2 = jnp.maximum(h2, 0.0).astype(jnp.bfloat16)
    out = jnp.dot(h2, w3_ref[...], preferred_element_type=jnp.float32) + b3_ref[...]
    o_ref[...] = out.astype(o_ref.dtype)   # bf16 writeback (accumulation stayed f32)


def pack_params(params_f32):
    """Cast / pad raw f32 PyTorch-layout params for the kernel.

    Weights are stored (in, out) so the kernel computes x @ W + b (== nn.Linear's x @ W.T + b).
    Only w3/b3 are zero-padded along N (10 -> 128); weights -> bf16, biases stay f32.
    """
    w1, b1, w2, b2, w3, b3 = params_f32
    w1p = w1.astype(jnp.bfloat16)                                     # (784, 256), no K pad
    w2p = w2.astype(jnp.bfloat16)                                     # (256, 128)
    w3p = jnp.pad(w3, ((0, 0), (0, N_PAD - N_OUT))).astype(jnp.bfloat16)   # (128, 128)
    b1p = b1.astype(jnp.float32)                                      # (1, 256)
    b2p = b2.astype(jnp.float32)                                      # (1, 128)
    b3p = jnp.pad(b3, ((0, 0), (0, N_PAD - N_OUT))).astype(jnp.float32)    # (1, 128)
    return (w1p, b1p, w2p, b2p, w3p, b3p)


@functools.partial(jax.jit, static_argnames=("tb_max",))
def mlp_forward(x, packed_params, tb_max=TB_MAX):
    """x: any shape flattening to (B, 784) (e.g. (B,1,28,28)). Returns (B, 10) f32 logits."""
    w1, b1, w2, b2, w3, b3 = packed_params

    x2d = x.reshape(-1, K_IN)          # no-copy reshape; stays f32, bf16 cast happens in-kernel
    B = x2d.shape[0]

    # Batch tile: multiple of 128; sized so large batches get >=2 grid steps (v7x 2 TCs) while
    # small batches (e.g. B=8) only pay a single 128-row tile of padded MXU work (v5e).
    TB = min(tb_max, TB_GRAN * max(1, pl.cdiv(pl.cdiv(B, 2), TB_GRAN)))
    n_tiles = pl.cdiv(B, TB)
    B_pad = TB * n_tiles
    if B_pad != B:                     # only pay the pad pass when not already tile-aligned
        x2d = jnp.pad(x2d, ((0, B_pad - B), (0, 0)))

    flops = 2 * B_pad * (K_IN * H1 + H1 * H2 + H2 * N_PAD)
    bytes_accessed = (
        x2d.size * x2d.dtype.itemsize
        + sum(int(a.size) * a.dtype.itemsize for a in (w1, b1, w2, b2, w3, b3))
        + B_pad * N_PAD * 2)           # bf16 output

    const = lambda shape: pl.BlockSpec(shape, lambda i: (0,) * len(shape))  # VMEM-resident

    out_padded = pl.pallas_call(
        mlp_kernel,
        out_shape=jax.ShapeDtypeStruct((B_pad, N_PAD), jnp.bfloat16),
        grid_spec=pltpu.PrefetchScalarGridSpec(
            num_scalar_prefetch=0,
            grid=(n_tiles,),
            in_specs=[
                pl.BlockSpec((TB, K_IN), lambda i: (i, 0)),   # x streams per batch tile (f32)
                const((K_IN, H1)), const((1, H1)),
                const((H1, H2)), const((1, H2)),
                const((H2, N_PAD)), const((1, N_PAD)),
            ],
            out_specs=pl.BlockSpec((TB, N_PAD), lambda i: (i, 0)),
        ),
        compiler_params=pltpu.CompilerParams(
            dimension_semantics=("parallel",),        # batch tiles independent -> 2-TC sharding
            vmem_limit_bytes=48 * 1024 * 1024,        # headroom for TB=2048 f32 x double-buffer
        ),
        cost_estimate=pl.CostEstimate(
            flops=flops, transcendentals=0, bytes_accessed=bytes_accessed),
    )(x2d, w1, b1, w2, b2, w3, b3)

    # Slice back to logical logits; cast of the tiny (B, 10) slice to f32 is negligible.
    return out_padded[:B, :N_OUT].astype(jnp.float32)


def init_params(key):
    """nn.Linear-default init (uniform(+-1/sqrt(fan_in))), weights stored as (in, out), f32."""
    def linear(k, fan_in, fan_out):
        kw, kb = jax.random.split(k)
        bound = 1.0 / jnp.sqrt(float(fan_in))
        w = jax.random.uniform(kw, (fan_in, fan_out), jnp.float32, -bound, bound)
        b = jax.random.uniform(kb, (1, fan_out), jnp.float32, -bound, bound)
        return w, b

    k1, k2, k3 = jax.random.split(key, 3)
    w1, b1 = linear(k1, K_IN, H1)
    w2, b2 = linear(k2, H1, H2)
    w3, b3 = linear(k3, H2, N_OUT)
    return (w1, b1, w2, b2, w3, b3)


if __name__ == "__main__":
    key = jax.random.PRNGKey(0)
    kp, kx1, kx2 = jax.random.split(key, 3)

    params_f32 = init_params(kp)
    packed = pack_params(params_f32)
    w1, b1, w2, b2, w3, b3 = params_f32

    def reference(xin):                      # plain f32 JAX, same math as the PyTorch module
        xr = xin.reshape(-1, K_IN)
        h = jnp.maximum(xr @ w1 + b1, 0.0)
        h = jnp.maximum(h @ w2 + b2, 0.0)
        return h @ w3 + b3

    # Small MNIST-like batch: (B, C, H, W) = (8, 1, 28, 28) -> flattens to (8, 784).
    x_small = jax.random.normal(kx1, (8, 1, 28, 28), jnp.float32)
    out_small = jax.block_until_ready(mlp_forward(x_small, packed))
    assert out_small.shape == (8, N_OUT)
    ref_small = reference(x_small)
    err_s = float(jnp.max(jnp.abs(out_small - ref_small)))
    assert jnp.allclose(out_small, ref_small, atol=5e-2, rtol=5e-2), err_s

    # Larger batch exercises the big-tile, >=2-grid-step (2 TensorCore) and no-pad paths.
    x_big = jax.random.normal(kx2, (4096, K_IN), jnp.float32)
    out_big = jax.block_until_ready(mlp_forward(x_big, packed))
    assert out_big.shape == (4096, N_OUT)
    ref_big = reference(x_big)
    err_b = float(jnp.max(jnp.abs(out_big - ref_big)))
    assert jnp.allclose(out_big, ref_big, atol=5e-2, rtol=5e-2), err_b

    print("KERNEL_OK")
</pallas_src>

<mosaic_0001>
module attributes {stable_mosaic.version = 11 : i64} {
  func.func @mlp_kernel(%arg0: i32, %arg1: memref<128x784xf32, #tpu.memory_space<vmem>>, %arg2: memref<784x256xbf16, #tpu.memory_space<vmem>>, %arg3: memref<1x256xf32, #tpu.memory_space<vmem>>, %arg4: memref<256x128xbf16, #tpu.memory_space<vmem>>, %arg5: memref<1x128xf32, #tpu.memory_space<vmem>>, %arg6: memref<128x128xbf16, #tpu.memory_space<vmem>>, %arg7: memref<1x128xf32, #tpu.memory_space<vmem>>, %arg8: memref<128x128xbf16, #tpu.memory_space<vmem>>) attributes {dimension_semantics = [#tpu.dimension_semantics<parallel>], iteration_bounds = array<i64: 1>, scalar_prefetch = 0 : i64, scratch_operands = 0 : i64, tpu.core_type = #tpu.core_type<tc>, window_params = [{transform_indices = @transform_0, window_bounds = array<i64: 128, 784>}, {pipeline_mode = #tpu.pipeline_mode<synchronous>, transform_indices = @transform_1, window_bounds = array<i64: 784, 256>}, {pipeline_mode = #tpu.pipeline_mode<synchronous>, transform_indices = @transform_2, window_bounds = array<i64: 1, 256>}, {pipeline_mode = #tpu.pipeline_mode<synchronous>, transform_indices = @transform_3, window_bounds = array<i64: 256, 128>}, {pipeline_mode = #tpu.pipeline_mode<synchronous>, transform_indices = @transform_4, window_bounds = array<i64: 1, 128>}, {pipeline_mode = #tpu.pipeline_mode<synchronous>, transform_indices = @transform_5, window_bounds = array<i64: 128, 128>}, {pipeline_mode = #tpu.pipeline_mode<synchronous>, transform_indices = @transform_6, window_bounds = array<i64: 1, 128>}, {transform_indices = @transform_7, window_bounds = array<i64: 128, 128>}]} {
    %c0 = arith.constant 0 : index
    %c0_0 = arith.constant 0 : index
    %0 = vector.load %arg1[%c0, %c0_0] : memref<128x784xf32, #tpu.memory_space<vmem>>, vector<128x784xf32>
    %1 = arith.truncf %0 : vector<128x784xf32> to vector<128x784xbf16>
    %c0_1 = arith.constant 0 : index
    %c0_2 = arith.constant 0 : index
    %2 = vector.load %arg2[%c0_1, %c0_2] : memref<784x256xbf16, #tpu.memory_space<vmem>>, vector<784x256xbf16>
    %cst = arith.constant dense<0.000000e+00> : vector<128x256xf32>
    %3 = tpu.matmul %1, %2, %cst {dimension_numbers = #tpu.dot_dimension_numbers<[1], [0], [0], [1], [0, 0, 1, 1], [], []>} : vector<128x784xbf16>, vector<784x256xbf16>, vector<128x256xf32> -> vector<128x256xf32>
    %c0_3 = arith.constant 0 : index
    %c0_4 = arith.constant 0 : index
    %4 = vector.load %arg3[%c0_3, %c0_4] : memref<1x256xf32, #tpu.memory_space<vmem>>, vector<1x256xf32>
    %5 = vector.broadcast %4 : vector<1x256xf32> to vector<128x256xf32>
    %6 = arith.addf %3, %5 : vector<128x256xf32>
    %cst_5 = arith.constant 0.000000e+00 : f32
    %7 = vector.broadcast %cst_5 : f32 to vector<128x256xf32>
    %8 = arith.maximumf %6, %7 : vector<128x256xf32>
    %9 = arith.truncf %8 : vector<128x256xf32> to vector<128x256xbf16>
    %c0_6 = arith.constant 0 : index
    %c0_7 = arith.constant 0 : index
    %10 = vector.load %arg4[%c0_6, %c0_7] : memref<256x128xbf16, #tpu.memory_space<vmem>>, vector<256x128xbf16>
    %cst_8 = arith.constant dense<0.000000e+00> : vector<128x128xf32>
    %11 = tpu.matmul %9, %10, %cst_8 {dimension_numbers = #tpu.dot_dimension_numbers<[1], [0], [0], [1], [0, 0, 1, 1], [], []>} : vector<128x256xbf16>, vector<256x128xbf16>, vector<128x128xf32> -> vector<128x128xf32>
    %c0_9 = arith.constant 0 : index
    %c0_10 = arith.constant 0 : index
    %12 = vector.load %arg5[%c0_9, %c0_10] : memref<1x128xf32, #tpu.memory_space<vmem>>, vector<1x128xf32>
    %13 = vector.broadcast %12 : vector<1x128xf32> to vector<128x128xf32>
    %14 = arith.addf %11, %13 : vector<128x128xf32>
    %cst_11 = arith.constant 0.000000e+00 : f32
    %15 = vector.broadcast %cst_11 : f32 to vector<128x128xf32>
    %16 = arith.maximumf %14, %15 : vector<128x128xf32>
    %17 = arith.truncf %16 : vector<128x128xf32> to vector<128x128xbf16>
    %c0_12 = arith.constant 0 : index
    %c0_13 = arith.constant 0 : index
    %18 = vector.load %arg6[%c0_12, %c0_13] : memref<128x128xbf16, #tpu.memory_space<vmem>>, vector<128x128xbf16>
    %cst_14 = arith.constant dense<0.000000e+00> : vector<128x128xf32>
    %19 = tpu.matmul %17, %18, %cst_14 {dimension_numbers = #tpu.dot_dimension_numbers<[1], [0], [0], [1], [0, 0, 1, 1], [], []>} : vector<128x128xbf16>, vector<128x128xbf16>, vector<128x128xf32> -> vector<128x128xf32>
    %c0_15 = arith.constant 0 : index
    %c0_16 = arith.constant 0 : index
    %20 = vector.load %arg7[%c0_15, %c0_16] : memref<1x128xf32, #tpu.memory_space<vmem>>, vector<1x128xf32>
    %21 = vector.broadcast %20 : vector<1x128xf32> to vector<128x128xf32>
    %22 = arith.addf %19, %21 : vector<128x128xf32>
    %23 = arith.truncf %22 : vector<128x128xf32> to vector<128x128xbf16>
    %c0_17 = arith.constant 0 : index
    %c0_18 = arith.constant 0 : index
    %24 = vector.load %arg8[%c0_17, %c0_18] : memref<128x128xbf16, #tpu.memory_space<vmem>>, vector<128x128xbf16>
    tpu.vector_store %arg8[%c0_17, %c0_18], %23 {strides = array<i32>} : memref<128x128xbf16, #tpu.memory_space<vmem>>, vector<128x128xbf16>,
    return
  }
  func.func @transform_0(%arg0: i32) -> (i32, i32) {
    %c0_i32 = arith.constant 0 : i32
    %c0_i32_0 = arith.constant 0 : i32
    return %arg0, %c0_i32 : i32, i32
  }
  func.func @transform_1(%arg0: i32) -> (i32, i32) {
    %c0_i32 = arith.constant 0 : i32
    %c0_i32_0 = arith.constant 0 : i32
    %c0_i32_1 = arith.constant 0 : i32
    return %c0_i32, %c0_i32_0 : i32, i32
  }
  func.func @transform_2(%arg0: i32) -> (i32, i32) {
    %c0_i32 = arith.constant 0 : i32
    %c0_i32_0 = arith.constant 0 : i32
    %c0_i32_1 = arith.constant 0 : i32
    return %c0_i32, %c0_i32_0 : i32, i32
  }
  func.func @transform_3(%arg0: i32) -> (i32, i32) {
    %c0_i32 = arith.constant 0 : i32
    %c0_i32_0 = arith.constant 0 : i32
    %c0_i32_1 = arith.constant 0 : i32
    return %c0_i32, %c0_i32_0 : i32, i32
  }
  func.func @transform_4(%arg0: i32) -> (i32, i32) {
    %c0_i32 = arith.constant 0 : i32
    %c0_i32_0 = arith.constant 0 : i32
    %c0_i32_1 = arith.constant 0 : i32
    return %c0_i32, %c0_i32_0 : i32, i32
  }
  func.func @transform_5(%arg0: i32) -> (i32, i32) {
    %c0_i32 = arith.constant 0 : i32
    %c0_i32_0 = arith.constant 0 : i32
    %c0_i32_1 = arith.constant 0 : i32
    return %c0_i32, %c0_i32_0 : i32, i32
  }
  func.func @transform_6(%arg0: i32) -> (i32, i32) {
    %c0_i32 = arith.constant 0 : i32
    %c0_i32_0 = arith.constant 0 : i32
    %c0_i32_1 = arith.constant 0 : i32
    return %c0_i32, %c0_i32_0 : i32, i32
  }
  func.func @transform_7(%arg0: i32) -> (i32, i32) {
    %c0_i32 = arith.constant 0 : i32
    %c0_i32_0 = arith.constant 0 : i32
    return %arg0, %c0_i32 : i32, i32
  }
}

</mosaic_0001>

<bundles_post_ra>
// kernel: mlp_forward.1
= control target key start
LH: loop header
LB: loop body
LE: loop exit
PB: predicated region body
PF: predicated region fallthrough
CT: control target
= control target key end

     0   :  { %vm795_vm0 = vcmask 130048   ;;  %s3365_s1 = inlined_call_operand.vmem [shape: bf16[784,256], index: 1, kind: input, shape index: {}]   ;;  %s3366_s0 = inlined_call_operand.vmem [shape: f32[128,784], index: 0, kind: input, shape index: {}]   ;;  %s3367_s3 = inlined_call_operand.vmem [shape: bf16[256,128], index: 3, kind: input, shape index: {}]   ;;  %s3368_s5 = inlined_call_operand.vmem [shape: bf16[128,128], index: 5, kind: input, shape index: {}]   ;;  %s3369_s2 = inlined_call_operand.vmem [shape: f32[1,256], index: 2, kind: input, shape index: {}]   ;;  %s3370_s4 = inlined_call_operand.vmem [shape: f32[1,128], index: 4, kind: input, shape index: {}]   ;;  %s3371_s6 = inlined_call_operand.vmem [shape: f32[1,128], index: 6, kind: input, shape index: {}]   ;;  %s3372_s7 = inlined_call_operand.vmem [shape: bf16[128,128], index: 7, kind: output, shape index: {}]  }
   0x1   :  { %v2280_v0 = vld [vmem:[%s3365_s1 + $0x104] ss:$8 sps:$4 sm:$0xff]   ;;  %v2282_v1 = vld [vmem:[%s3365_s1 + $0x100] ss:$8 sps:$4 sm:$0xff]   ;;  %v2283_v2 = vld [vmem:[%s3365_s1 + $0x114] ss:$8 sps:$4 sm:$0xff]  }
   0x2   :  { %933 = vmatprep.subr.bf16.mxu0 %v2280_v0  ;;  %v2285_v3 = vld [vmem:[%s3365_s1 + $0x110] ss:$8 sps:$4 sm:$0xff]   ;;  %v2286_v4 = vld [vmem:[%s3365_s1 + $0x124] ss:$8 sps:$4 sm:$0xff]   ;;  %v2288_v5 = vld [vmem:[%s3365_s1 + $0x120] ss:$8 sps:$4 sm:$0xff]  }
   0x3   :  { %934 = vmatpush1.bf16.msra.mxu0 %v2282_v1  ;;  %v2289_v6 = vld [vmem:[%s3365_s1 + $0x134] ss:$8 sps:$4 sm:$0xff]   ;;  %v2291_v7 = vld [vmem:[%s3365_s1 + $0x130] ss:$8 sps:$4 sm:$0xff]   ;;  %v2292_v8 = vld [vmem:[%s3365_s1 + $0x144] ss:$8 sps:$4 sm:$0xff]  }
   0x4   :  { %935 = vmatprep.subr.bf16.mxu0 %v2283_v2  ;;  %v2294_v9 = vld [vmem:[%s3365_s1 + $0x140] ss:$8 sps:$4 sm:$0xff]   ;;  %v2295_v10 = vld [vmem:[%s3365_s1 + $0x154] ss:$8 sps:$4 sm:$0xff]   ;;  %v2297_v11 = vld [vmem:[%s3365_s1 + $0x150] ss:$8 sps:$4 sm:$0xff]  }
   0x5   :  { %v2298_v12 = vld [vmem:[%s3365_s1 + $0x164] ss:$8 sps:$4 sm:$0xff]   ;;  %v30_v13 = vld [vmem:[%s3366_s0 + $0x18] sm:$0xff]  ;;  %v37_v14 = vld [vmem:[%s3366_s0 + $0x50] sm:$0xff] }
   0x6   :  { %v142_v15 = vpack.c.bf16 %v37_v14, %v30_v13  ;;  %v2300_v16 = vld [vmem:[%s3365_s1 + $0x160] ss:$8 sps:$4 sm:$0xff]   ;;  %v2301_v17 = vld [vmem:[%s3365_s1 + $0x174] ss:$8 sps:$4 sm:$0xff]   ;;  %v2303_v18 = vld [vmem:[%s3365_s1 + $0x170] ss:$8 sps:$4 sm:$0xff]  }
   0x7   :  { %936 = vmatpush1.bf16.msra.mxu0 %v2285_v3  ;;  %v2304_v19 = vld [vmem:[%s3365_s1 + $0x184] ss:$8 sps:$4 sm:$0xff]   ;;  %v2306_v20 = vld [vmem:[%s3365_s1 + $0x180] ss:$8 sps:$4 sm:$0xff]   ;;  %v2307_v21 = vld [vmem:[%s3365_s1 + $0x194] ss:$8 sps:$4 sm:$0xff]  }
   0x8   :  { %937 = vmatprep.subr.bf16.mxu0 %v2286_v4  ;;  %965 = vmatprep.mubr.bf16.mxu0 %v142_v15  ;;  %v2309_v22 = vld [vmem:[%s3365_s1 + $0x190] ss:$8 sps:$4 sm:$0xff]   ;;  %v2310_v23 = vld [vmem:[%s3365_s1 + $0x1a4] ss:$8 sps:$4 sm:$0xff]   ;;  %v2312_v24 = vld [vmem:[%s3365_s1 + $0x1a0] ss:$8 sps:$4 sm:$0xff]  }
   0x9   :  { %v2313_v25 = vld [vmem:[%s3365_s1 + $0x1b4] ss:$8 sps:$4 sm:$0xff]   ;;  %v2315_v26 = vld [vmem:[%s3365_s1 + $0x1b0] ss:$8 sps:$4 sm:$0xff]   ;;  %v2316_v27 = vld [vmem:[%s3365_s1 + $0x1c4] ss:$8 sps:$4 sm:$0xff]  }
   0xa   :  { %v2318_v28 = vld [vmem:[%s3365_s1 + $0x1c0] ss:$8 sps:$4 sm:$0xff]   ;;  %v2319_v29 = vld [vmem:[%s3365_s1 + $0x1d4] ss:$8 sps:$4 sm:$0xff]   ;;  %v2321_v30 = vld [vmem:[%s3365_s1 + $0x1d0] ss:$8 sps:$4 sm:$0xff]  }
   0xb   :  { %938 = vmatpush1.bf16.msra.mxu0 %v2288_v5  ;;  %v2322_v31 = vld [vmem:[%s3365_s1 + $0x1e4] ss:$8 sps:$4 sm:$0xff]   ;;  %v2378_v33 = vld [vmem:[%s3365_s1] ss:$8 sps:$4 sm:$0xff]   ;;  %v2325_v35 = vld [vmem:[%s3365_s1 + $0x1f4] ss:$8 sps:$4 sm:$0xff]  }
   0xc   :  { %939 = vmatprep.subr.bf16.mxu0 %v2289_v6  ;;  %v2373_v32 = vld [vmem:[%s3365_s1 + $0x4] ss:$8 sps:$4 sm:$0xff]   ;;  %v2324_v34 = vld [vmem:[%s3365_s1 + $0x1e0] ss:$8 sps:$4 sm:$0xff]   ;;  %v2379_v36 = vld [vmem:[%s3365_s1 + $0x14] ss:$8 sps:$4 sm:$0xff]  }
   0xd   :  { %820 = vmatprep.subr.bf16.mxu1 %v2373_v32  ;;  %v2327_v37 = vld [vmem:[%s3365_s1 + $0x1f0] ss:$8 sps:$4 sm:$0xff]   ;;  %v36_v39 = vld [vmem:[%s3366_s0 + $0x48] sm:$0xff]  ;;  %v51_v44 = vld [vmem:[%s3366_s0 + $0xc0] sm:$0xff] }
   0xe   :  { %821 = vmatpush1.bf16.msra.mxu1 %v2378_v33  ;;  %v29_v38 = vld [vmem:[%s3366_s0 + $0x10] sm:$0xff]  ;;  %v2330_v40 = vld [vmem:[%s3365_s1 + $0x204] ss:$8 sps:$4 sm:$0xff]   ;;  %v2387_v45 = vld [vmem:[%s3365_s1 + $0x20] ss:$8 sps:$4 sm:$0xff]  }
   0xf   :  { %940 = vmatpush1.bf16.msra.mxu0 %v2291_v7  ;;  %822 = vmatprep.subr.bf16.mxu1 %v2379_v36  ;;  %v2384_v41 = vld [vmem:[%s3365_s1 + $0x10] ss:$8 sps:$4 sm:$0xff]   ;;  %v44_v42 = vld [vmem:[%s3366_s0 + $0x88] sm:$0xff]  ;;  %v2388_v46 = vld [vmem:[%s3365_s1 + $0x34] ss:$8 sps:$4 sm:$0xff]   ;;  %v141_v47 = vpack.c.bf16 %v36_v39, %v29_v38 }
  0x10   :  { %941 = vmatprep.subr.bf16.mxu0 %v2292_v8  ;;  %v2385_v43 = vld [vmem:[%s3365_s1 + $0x24] ss:$8 sps:$4 sm:$0xff]   ;;  %v2328_v48 = vld [vmem:[%s3365_s1 + $0x200] ss:$8 sps:$4 sm:$0xff]   ;;  %v149_v49 = vpack.c.bf16 %v51_v44, %v44_v42  ;;  %v2333_v50 = vld [vmem:[%s3365_s1 + $0x214] ss:$8 sps:$4 sm:$0xff]  }
  0x11   :  { %v2390_v51 = vld [vmem:[%s3365_s1 + $0x30] ss:$8 sps:$4 sm:$0xff]   ;;  %v2391_v53 = vld [vmem:[%s3365_s1 + $0x44] ss:$8 sps:$4 sm:$0xff]   ;;  %v2393_v59 = vld [vmem:[%s3365_s1 + $0x40] ss:$8 sps:$4 sm:$0xff]  }
  0x12   :  { %823 = vmatpush1.bf16.msra.mxu1 %v2384_v41  ;;  %v2331_v52 = vld [vmem:[%s3365_s1 + $0x210] ss:$8 sps:$4 sm:$0xff]   ;;  %v43_v54 = vld [vmem:[%s3366_s0 + $0x80] sm:$0xff]  ;;  %v2394_v60 = vld [vmem:[%s3365_s1 + $0x54] ss:$8 sps:$4 sm:$0xff]  }
  0x13   :  { %942 = vmatpush1.bf16.msra.mxu0 %v2294_v9  ;;  %824 = vmatprep.subr.bf16.mxu1 %v2385_v43  ;;  %v50_v55 = vld [vmem:[%s3366_s0 + $0xb8] sm:$0xff]  ;;  %v2336_v56 = vld [vmem:[%s3365_s1 + $0x224] ss:$8 sps:$4 sm:$0xff]   ;;  %v65_v58 = vld [vmem:[%s3366_s0 + $0x130] sm:$0xff] }
  0x14   :  { %943 = vmatprep.subr.bf16.mxu0 %v2295_v10  ;;  %v58_v57 = vld [vmem:[%s3366_s0 + $0xf8] sm:$0xff]  ;;  %v148_v61 = vpack.c.bf16 %v50_v55, %v43_v54  ;;  %v2334_v62 = vld [vmem:[%s3365_s1 + $0x220] ss:$8 sps:$4 sm:$0xff]   ;;  %v2397_v3 = vld [vmem:[%s3365_s1 + $0x64] ss:$8 sps:$4 sm:$0xff]  }
  0x15   :  { %v156_v63 = vpack.c.bf16 %v65_v58, %v58_v57  ;;  %v2339_v0 = vld [vmem:[%s3365_s1 + $0x234] ss:$8 sps:$4 sm:$0xff]   ;;  %v2396_v1 = vld [vmem:[%s3365_s1 + $0x50] ss:$8 sps:$4 sm:$0xff]   ;;  %v64_v5 = vld [vmem:[%s3366_s0 + $0x128] sm:$0xff] }
  0x16   :  { %825 = vmatpush1.bf16.msra.mxu1 %v2387_v45  ;;  %v2337_v2 = vld [vmem:[%s3365_s1 + $0x230] ss:$8 sps:$4 sm:$0xff]   ;;  %v2342_v6 = vld [vmem:[%s3365_s1 + $0x244] ss:$8 sps:$4 sm:$0xff]   ;;  %v2399_v9 = vld [vmem:[%s3365_s1 + $0x60] ss:$8 sps:$4 sm:$0xff]  }
  0x17   :  { %944 = vmatpush1.bf16.msra.mxu0 %v2297_v11  ;;  %826 = vmatprep.subr.bf16.mxu1 %v2388_v46  ;;  %v57_v4 = vld [vmem:[%s3366_s0 + $0xf0] sm:$0xff]  ;;  %v72_v7 = vld [vmem:[%s3366_s0 + $0x168] sm:$0xff]  ;;  %v79_v8 = vld [vmem:[%s3366_s0 + $0x1a0] sm:$0xff] }
  0x18   :  { %945 = vmatprep.subr.bf16.mxu0 %v2298_v12  ;;  %v2400_v10 = vld [vmem:[%s3365_s1 + $0x74] ss:$8 sps:$4 sm:$0xff]   ;;  %v155_v11 = vpack.c.bf16 %v64_v5, %v57_v4  ;;  %v2340_v12 = vld [vmem:[%s3365_s1 + $0x240] ss:$8 sps:$4 sm:$0xff]   ;;  %v163_v13 = vpack.c.bf16 %v79_v8, %v72_v7  ;;  %v2402_v15 = vld [vmem:[%s3365_s1 + $0x70] ss:$8 sps:$4 sm:$0xff]  }
  0x19   :  { %v2345_v14 = vld [vmem:[%s3365_s1 + $0x254] ss:$8 sps:$4 sm:$0xff]   ;;  %v2409_v33 = vld [vmem:[%s3365_s1 + $0xa4] ss:$8 sps:$4 sm:$0xff]   ;;  %v2352_v43 = vld [vmem:[%s3365_s1 + $0x280] ss:$8 sps:$4 sm:$0xff]  }
  0x1a   :  { %827 = vmatpush1.bf16.msra.mxu1 %v2390_v51  ;;  %v92_v36 = vld [vmem:[%s3366_s0 + $0x208] sm:$0xff]  ;;  %v107_v39 = vld [vmem:[%s3366_s0 + $0x280] sm:$0xff]  ;;  %v2412_v41 = vld [vmem:[%s3365_s1 + $0xb4] ss:$8 sps:$4 sm:$0xff]  }
  0x1b   :  { %946 = vmatpush1.bf16.msra.mxu0 %v2300_v16  ;;  %828 = vmatprep.subr.bf16.mxu1 %v2391_v53  ;;  %v2343_v16 = vld [vmem:[%s3365_s1 + $0x250] ss:$8 sps:$4 sm:$0xff]   ;;  %v100_v38 = vld [vmem:[%s3366_s0 + $0x248] sm:$0xff]  ;;  %v2357_v45 = vld [vmem:[%s3365_s1 + $0x294] ss:$8 sps:$4 sm:$0xff]  }
  0x1c   :  { %947 = vmatprep.subr.bf16.mxu0 %v2301_v17  ;;  %v2403_v17 = vld [vmem:[%s3365_s1 + $0x84] ss:$8 sps:$4 sm:$0xff]   ;;  %v177_v44 = vpack.c.bf16 %v107_v39, %v100_v38  ;;  %v2414_v46 = vld [vmem:[%s3365_s1 + $0xb0] ss:$8 sps:$4 sm:$0xff]   ;;  %v2417_v54 = vld [vmem:[%s3365_s1 + $0xc0] ss:$8 sps:$4 sm:$0xff]  }
  0x1d   :  { %v2360_v51 = vld [vmem:[%s3365_s1 + $0x2a4] ss:$8 sps:$4 sm:$0xff]   ;;  %v121_v53 = vld [vmem:[%s3366_s0 + $0x2f0] sm:$0xff]  ;;  %v2358_v57 = vld [vmem:[%s3365_s1 + $0x2a0] ss:$8 sps:$4 sm:$0xff]  }
  0x1e   :  { %829 = vmatpush1.bf16.msra.mxu1 %v2393_v59  ;;  %v2418_v55 = vld [vmem:[%s3365_s1 + $0xd4] ss:$8 sps:$4 sm:$0xff]   ;;  %v2423_v4 = vld [vmem:[%s3365_s1 + $0xe0] ss:$8 sps:$4 sm:$0xff]  }
  0x1f   :  { %948 = vmatpush1.bf16.msra.mxu0 %v2303_v18  ;;  %830 = vmatprep.subr.bf16.mxu1 %v2394_v60  ;;  %v71_v18 = vld [vmem:[%s3366_s0 + $0x160] sm:$0xff]  ;;  %v2363_v59 = vld [vmem:[%s3365_s1 + $0x2b4] ss:$8 sps:$4 sm:$0xff]   ;;  %v2420_v60 = vld [vmem:[%s3365_s1 + $0xd0] ss:$8 sps:$4 sm:$0xff]  }
  0x20   :  { %949 = vmatprep.subr.bf16.mxu0 %v2304_v19  ;;  %v78_v19 = vld [vmem:[%s3366_s0 + $0x198] sm:$0xff]  ;;  %v2364_v7 = vld [vmem:[%s3365_s1 + $0x2c0] ss:$8 sps:$4 sm:$0xff]  }
  0x21   :  { %v2424_v5 = vld [vmem:[%s3365_s1 + $0xf4] ss:$8 sps:$4 sm:$0xff]   ;;  %v2427_v38 = vld [vmem:[%s3367_s3 + $0x40] sm:$0xff]  }
  0x22   :  { %831 = vmatpush1.bf16.msra.mxu1 %v2396_v1  ;;  %v2366_v1 = vld [vmem:[%s3365_s1 + $0x2c4] ss:$8 sps:$4 sm:$0xff]   ;;  %v2369_v8 = vld [vmem:[%s3365_s1 + $0x2d4] ss:$8 sps:$4 sm:$0xff]  }
  0x23   :  { %950 = vmatpush1.bf16.msra.mxu0 %v2306_v20  ;;  %832 = vmatprep.subr.bf16.mxu1 %v2397_v3  ;;  %v2348_v20 = vld [vmem:[%s3365_s1 + $0x264] ss:$8 sps:$4 sm:$0xff]  }
  0x24   :  { %951 = vmatprep.subr.bf16.mxu0 %v2307_v21  ;;  %v86_v21 = vld [vmem:[%s3366_s0 + $0x1d8] sm:$0xff]  ;;  %v135_v3 = vld [vmem:[%s3366_s0 + $0x360] sm:$0xff] }
  0x26   :  { %833 = vmatpush1.bf16.msra.mxu1 %v2399_v9 }
  0x27   :  { %952 = vmatpush1.bf16.msra.mxu0 %v2309_v22  ;;  %834 = vmatprep.subr.bf16.mxu1 %v2400_v10  ;;  %v93_v22 = vld [vmem:[%s3366_s0 + $0x210] sm:$0xff] }
  0x28   :  { %953 = vmatprep.subr.bf16.mxu0 %v2310_v23  ;;  %v2405_v23 = vld [vmem:[%s3365_s1 + $0x80] ss:$8 sps:$4 sm:$0xff]   ;;  %v2426_v10 = vld [vmem:[%s3365_s1 + $0xf0] ss:$8 sps:$4 sm:$0xff]  }
  0x2a   :  { %835 = vmatpush1.bf16.msra.mxu1 %v2402_v15  ;;  %v2367_v15 = vld [vmem:[%s3365_s1 + $0x2d0] ss:$8 sps:$4 sm:$0xff]  }
  0x2b   :  { %954 = vmatpush1.bf16.msra.mxu0 %v2312_v24  ;;  %836 = vmatprep.subr.bf16.mxu1 %v2403_v17  ;;  %v2406_v24 = vld [vmem:[%s3365_s1 + $0x94] ss:$8 sps:$4 sm:$0xff]  }
  0x2c   :  { %955 = vmatprep.subr.bf16.mxu0 %v2313_v25  ;;  %v162_v25 = vpack.c.bf16 %v78_v19, %v71_v18  ;;  %v134_v17 = vld [vmem:[%s3366_s0 + $0x358] sm:$0xff]  ;;  %v2372_v19 = vld [vmem:[%s3365_s1 + $0x2e4] ss:$8 sps:$4 sm:$0xff]  }
  0x2e   :  { %837 = vmatpush1.bf16.msra.mxu1 %v2405_v23 }
  0x2f   :  { %956 = vmatpush1.bf16.msra.mxu0 %v2315_v26  ;;  %v28_v26 = vld [vmem:[%s3366_s0 + $0x8] sm:$0xff]  ;;  %838 = vmatprep.subr.bf16.mxu1 %v2406_v24 }
  0x30   :  { %957 = vmatprep.subr.bf16.mxu0 %v2316_v27  ;;  %v2346_v27 = vld [vmem:[%s3365_s1 + $0x260] ss:$8 sps:$4 sm:$0xff]  }
  0x31   :  { %v2370_v24 = vld [vmem:[%s3365_s1 + $0x2e0] ss:$8 sps:$4 sm:$0xff]  }
  0x33   :  { %958 = vmatpush1.bf16.msra.mxu0 %v2318_v28  ;;  %v170_v28 = vpack.c.bf16 %v93_v22, %v86_v21  ;;  %v39_v21 = vld [vmem:[%s3366_s0 + $0x60] sm:$0xff] }
  0x34   :  { %959 = vmatprep.subr.bf16.mxu0 %v2319_v29  ;;  %v35_v29 = vld [vmem:[%s3366_s0 + $0x40] sm:$0xff] }
  0x35   :  { %v140_v32 = vpack.c.bf16 %v35_v29, %v28_v26  ;;  %v2377_v26 = vld [vmem:[%s3365_s1 + $0x2f4] ss:$8 sps:$4 sm:$0xff]   ;;  %v2375_v29 = vld [vmem:[%s3365_s1 + $0x2f0] ss:$8 sps:$4 sm:$0xff]  }
  0x37   :  { %960 = vmatpush1.bf16.msra.mxu0 %v2321_v30  ;;  %v2351_v30 = vld [vmem:[%s3365_s1 + $0x274] ss:$8 sps:$4 sm:$0xff]   ;;  %852 = vmatprep.mubr.bf16.mxu1 %v140_v32  ;;  %v56_v32 = vld [vmem:[%s3366_s0 + $0xe8] sm:$0xff] }
  0x38   :  { %961 = vmatprep.subr.bf16.mxu0 %v2322_v31  ;;  %v2408_v31 = vld [vmem:[%s3365_s1 + $0x90] ss:$8 sps:$4 sm:$0xff]  }
  0x39   :  { %839 = vmatpush1.bf16.msra.mxu1 %v2408_v31  ;;  %v38_v31 = vld [vmem:[%s3366_s0 + $0x58] sm:$0xff] }
  0x3a   :  { %840 = vmatprep.subr.bf16.mxu1 %v2409_v33  ;;  %v63_v33 = vld [vmem:[%s3366_s0 + $0x120] sm:$0xff] }
  0x3b   :  { %962 = vmatpush1.bf16.msra.mxu0 %v2324_v34  ;;  %v2349_v34 = vld [vmem:[%s3365_s1 + $0x270] ss:$8 sps:$4 sm:$0xff]   ;;  %v154_v39 = vpack.c.bf16 %v63_v33, %v56_v32 }
  0x3c   :  { %963 = vmatprep.subr.bf16.mxu0 %v2325_v35  ;;  %v85_v35 = vld [vmem:[%s3366_s0 + $0x1d0] sm:$0xff]  ;;  %v94_v32 = vld [vmem:[%s3366_s0 + $0x218] sm:$0xff] }
  0x3d   :  { %v169_v42 = vpack.c.bf16 %v92_v36, %v85_v35  ;;  %v46_v35 = vld [vmem:[%s3366_s0 + $0x98] sm:$0xff]  ;;  %v53_v36 = vld [vmem:[%s3366_s0 + $0xd0] sm:$0xff] }
  0x3f   :  { %964 = vmatpush1.bf16.msra.mxu0 %v2327_v37  ;;  %v2354_v37 = vld [vmem:[%s3365_s1 + $0x284] ss:$8 sps:$4 sm:$0xff]  }
  0x40   :  { %1046 = vmatprep.subr.bf16.mxu0 %v2330_v40  ;;  %v2411_v40 = vld [vmem:[%s3365_s1 + $0xa0] ss:$8 sps:$4 sm:$0xff]  }
  0x41   :  { %841 = vmatpush1.bf16.msra.mxu1 %v2411_v40  ;;  %v2428_v40 = vld [vmem:[%s3367_s3] sm:$0xff]  }
  0x42   :  { %966 = vmatmul.mubr.bf16.vlgmr.msra.gmra.mrb[0].mxu0 %v141_v47  ;;  %842 = vmatprep.subr.bf16.mxu1 %v2412_v41  ;;  %v2415_v47 = vld [vmem:[%s3365_s1 + $0xc4] ss:$8 sps:$4 sm:$0xff]   ;;  %v2381_v41 = vld [vmem:[%s3365_s1 + $0x300] ss:$8 sps:$4 sm:$0xff]  }
  0x43   :  { %1047 = vmatpush1.bf16.msra.mxu0 %v2328_v48  ;;  %975 = vmatprep.mubr.bf16.mxu0 %v149_v49  ;;  %v2355_v48 = vld [vmem:[%s3365_s1 + $0x290] ss:$8 sps:$4 sm:$0xff]   ;;  %v99_v49 = vld [vmem:[%s3366_s0 + $0x240] sm:$0xff] }
  0x44   :  { %1048 = vmatprep.subr.bf16.mxu0 %v2333_v50  ;;  %v106_v50 = vld [vmem:[%s3366_s0 + $0x278] sm:$0xff] }
  0x45   :  { %843 = vmatpush1.bf16.msra.mxu1 %v2414_v46  ;;  %v2430_v46 = vld [vmem:[%s3367_s3 + $0x8] sm:$0xff]  }
  0x46   :  { %844 = vmatprep.subr.bf16.mxu1 %v2415_v47  ;;  %v151_v47 = vpack.c.bf16 %v53_v36, %v46_v35  ;;  %v109_v35 = vld [vmem:[%s3366_s0 + $0x290] sm:$0xff] }
  0x47   :  { %1049 = vmatpush1.bf16.msra.mxu0 %v2331_v52  ;;  %v114_v52 = vld [vmem:[%s3366_s0 + $0x2b8] sm:$0xff] }
  0x48   :  { %1050 = vmatprep.subr.bf16.mxu0 %v2336_v56  ;;  %v176_v56 = vpack.c.bf16 %v106_v50, %v99_v49  ;;  %v184_v58 = vpack.c.bf16 %v121_v53, %v114_v52  ;;  %v2431_v49 = vld [vmem:[%s3367_s3 + $0x50] sm:$0xff]   ;;  %v60_v53 = vld [vmem:[%s3366_s0 + $0x108] sm:$0xff] }
  0x49   :  { %845 = vmatpush1.bf16.msra.mxu1 %v2417_v54  ;;  %v45_v50 = vld [vmem:[%s3366_s0 + $0x90] sm:$0xff] }
  0x4a   :  { %976 = vmatmul.mubr.bf16.gmra.mrb[4].mxu0 %v148_v61  ;;  %846 = vmatprep.subr.bf16.mxu1 %v2418_v55  ;;  %v2421_v61 = vld [vmem:[%s3365_s1 + $0xe4] ss:$8 sps:$4 sm:$0xff]   ;;  %v77_v52 = vld [vmem:[%s3366_s0 + $0x190] sm:$0xff] }
  0x4b   :  { %1051 = vmatpush1.bf16.msra.mxu0 %v2334_v62  ;;  %985 = vmatprep.mubr.bf16.mxu0 %v156_v63  ;;  %v2361_v62 = vld [vmem:[%s3365_s1 + $0x2b0] ss:$8 sps:$4 sm:$0xff]  }
  0x4c   :  { %1052 = vmatprep.subr.bf16.mxu0 %v2339_v0  ;;  %v113_v63 = vld [vmem:[%s3366_s0 + $0x2b0] sm:$0xff]  ;;  %v120_v0 = vld [vmem:[%s3366_s0 + $0x2e8] sm:$0xff] }
  0x4d   :  { %847 = vmatpush1.bf16.msra.mxu1 %v2420_v60  ;;  %v2432_v54 = vld [vmem:[%s3367_s3 + $0x10] sm:$0xff]  }
  0x4e   :  { %848 = vmatprep.subr.bf16.mxu1 %v2421_v61  ;;  %v69_v60 = vld [vmem:[%s3366_s0 + $0x150] sm:$0xff]  ;;  %v76_v61 = vld [vmem:[%s3366_s0 + $0x188] sm:$0xff] }
  0x4f   :  { %1053 = vmatpush1.bf16.msra.mxu0 %v2337_v2  ;;  %v128_v2 = vld [vmem:[%s3366_s0 + $0x328] sm:$0xff] }
  0x50   :  { %1054 = vmatprep.subr.bf16.mxu0 %v2342_v6  ;;  %v183_v6 = vpack.c.bf16 %v120_v0, %v113_v63  ;;  %v191_v9 = vpack.c.bf16 %v135_v3, %v128_v2  ;;  %v84_v0 = vld [vmem:[%s3366_s0 + $0x1c8] sm:$0xff]  ;;  %v91_v2 = vld [vmem:[%s3366_s0 + $0x200] sm:$0xff] }
  0x51   :  { %849 = vmatpush1.bf16.msra.mxu1 %v2423_v4  ;;  %v2436_v3 = vld [vmem:[%s3367_s3 + $0x20] sm:$0xff]  }
  0x52   :  { %986 = vmatmul.mubr.bf16.gmra.mrb[8].mxu0 %v155_v11  ;;  %v27_v11 = vld [vmem:[%s3366_s0] sm:$0xff]  ;;  %850 = vmatprep.subr.bf16.mxu1 %v2424_v5  ;;  %v66_v5 = vld [vmem:[%s3366_s0 + $0x138] sm:$0xff] }
  0x53   :  { %1055 = vmatpush1.bf16.msra.mxu0 %v2340_v12  ;;  %995 = vmatprep.mubr.bf16.mxu0 %v163_v13  ;;  %v34_v12 = vld [vmem:[%s3366_s0 + $0x38] sm:$0xff]  ;;  %v59_v4 = vld [vmem:[%s3366_s0 + $0x100] sm:$0xff] }
  0x54   :  { %1056 = vmatprep.subr.bf16.mxu0 %v2345_v14  ;;  %v42_v13 = vld [vmem:[%s3366_s0 + $0x78] sm:$0xff]  ;;  %v49_v14 = vld [vmem:[%s3366_s0 + $0xb0] sm:$0xff]  ;;  %v139_v18 = vpack.c.bf16 %v34_v12, %v27_v11  ;;  %v157_v11 = vpack.c.bf16 %v66_v5, %v59_v4  ;;  %v2438_v12 = vld [vmem:[%s3367_s3 + $0x28] sm:$0xff]  }
  0x55   :  { %851 = vmatpush1.bf16.msra.mxu1 %v2426_v10  ;;  %v147_v22 = vpack.c.bf16 %v49_v14, %v42_v13  ;;  %v168_v10 = vpack.c.bf16 %v91_v2, %v84_v0  ;;  %v2439_v14 = vld [vmem:[%s3367_s3 + $0x70] sm:$0xff]   ;;  %v54_v4 = vld [vmem:[%s3366_s0 + $0xd8] sm:$0xff] }
  0x56   :  { %2039 = vmatprep.subr.bf16.mxu1 %v2427_v38  ;;  %v33_v0 = vld [vmem:[%s3366_s0 + $0x30] sm:$0xff] }
  0x57   :  { %1057 = vmatpush1.bf16.msra.mxu0 %v2343_v16  ;;  %v127_v16 = vld [vmem:[%s3366_s0 + $0x320] sm:$0xff] }
  0x58   :  { %1058 = vmatprep.subr.bf16.mxu0 %v2348_v20  ;;  %v32_v20 = vld [vmem:[%s3366_s0 + $0x28] sm:$0xff]  ;;  %v190_v23 = vpack.c.bf16 %v134_v17, %v127_v16  ;;  %853 = vmatmul.mubr.bf16.vlgmr.msra.gmra.mrb[0].mxu1 %v139_v18  ;;  %v90_v16 = vld [vmem:[%s3366_s0 + $0x1f8] sm:$0xff]  ;;  %v105_v18 = vld [vmem:[%s3366_s0 + $0x270] sm:$0xff] }
  0x59   :  { %862 = vmatprep.mubr.bf16.mxu1 %v147_v22  ;;  %2040 = vmatpush3.bf16.msra.mxu1 %v2428_v40  ;;  %v98_v17 = vld [vmem:[%s3366_s0 + $0x238] sm:$0xff]  ;;  %v88_v22 = vld [vmem:[%s3366_s0 + $0x1e8] sm:$0xff] }
  0x5a   :  { %996 = vmatmul.mubr.bf16.gmra.mrb[12].mxu0 %v162_v25  ;;  %v144_v25 = vpack.c.bf16 %v39_v21, %v32_v20  ;;  %v80_v20 = vld [vmem:[%s3366_s0 + $0x1a8] sm:$0xff]  ;;  %v118_v40 = vld [vmem:[%s3366_s0 + $0x2d8] sm:$0xff] }
  0x5b   :  { %1059 = vmatpush1.bf16.msra.mxu0 %v2346_v27  ;;  %1005 = vmatprep.mubr.bf16.mxu0 %v170_v28  ;;  %v41_v27 = vld [vmem:[%s3366_s0 + $0x70] sm:$0xff]  ;;  %v48_v28 = vld [vmem:[%s3366_s0 + $0xa8] sm:$0xff] }
  0x5c   :  { %1060 = vmatprep.subr.bf16.mxu0 %v2351_v30  ;;  %v31_v30 = vld [vmem:[%s3366_s0 + $0x20] sm:$0xff] }
  0x5f   :  { %1061 = vmatpush1.bf16.msra.mxu0 %v2349_v34  ;;  %v2383_v34 = vld [vmem:[%s3365_s1 + $0x304] ss:$8 sps:$4 sm:$0xff]  }
  0x60   :  { %1062 = vmatprep.subr.bf16.mxu0 %v2354_v37  ;;  %v146_v37 = vpack.c.bf16 %v48_v28, %v41_v27  ;;  %v97_v27 = vld [vmem:[%s3366_s0 + $0x230] sm:$0xff]  ;;  %v104_v28 = vld [vmem:[%s3366_s0 + $0x268] sm:$0xff] }
  0x61   :  { %v174_v33 = vpack.c.bf16 %v104_v28, %v97_v27 }
  0x62   :  { %1006 = vmatmul.mubr.bf16.gmra.mrb[16].mxu0 %v169_v42  ;;  %v2429_v42 = vld [vmem:[%s3367_s3 + $0x48] sm:$0xff]   ;;  %863 = vmatmul.mubr.bf16.gmra.mrb[4].mxu1 %v146_v37 }
  0x63   :  { %1063 = vmatpush1.bf16.msra.mxu0 %v2352_v43  ;;  %1015 = vmatprep.mubr.bf16.mxu0 %v177_v44  ;;  %v143_v43 = vpack.c.bf16 %v38_v31, %v31_v30  ;;  %v55_v44 = vld [vmem:[%s3366_s0 + $0xe0] sm:$0xff] }
  0x64   :  { %1064 = vmatprep.subr.bf16.mxu0 %v2357_v45  ;;  %v62_v45 = vld [vmem:[%s3366_s0 + $0x118] sm:$0xff]  ;;  %872 = vmatprep.mubr.bf16.mxu1 %v154_v39  ;;  %v119_v30 = vld [vmem:[%s3366_s0 + $0x2e0] sm:$0xff] }
  0x65   :  { %2041 = vmatprep.subr.bf16.mxu1 %v2429_v42  ;;  %v153_v55 = vpack.c.bf16 %v62_v45, %v55_v44  ;;  %v87_v31 = vld [vmem:[%s3366_s0 + $0x1e0] sm:$0xff]  ;;  %v133_v42 = vld [vmem:[%s3366_s0 + $0x350] sm:$0xff]  ;;  %v108_v44 = vld [vmem:[%s3366_s0 + $0x288] sm:$0xff] }
  0x66   :  { %2042 = vmatpush3.bf16.msra.mxu1 %v2430_v46  ;;  %v171_v37 = vpack.c.bf16 %v94_v32, %v87_v31  ;;  %v111_v39 = vld [vmem:[%s3366_s0 + $0x2a0] sm:$0xff]  ;;  %v116_v46 = vld [vmem:[%s3366_s0 + $0x2c8] sm:$0xff] }
  0x67   :  { %1065 = vmatpush1.bf16.msra.mxu0 %v2355_v48  ;;  %v70_v48 = vld [vmem:[%s3366_s0 + $0x158] sm:$0xff]  ;;  %2043 = vmatprep.subr.bf16.mxu1 %v2431_v49  ;;  %v181_v45 = vpack.c.bf16 %v118_v40, %v111_v39 }
  0x68   :  { %1066 = vmatprep.subr.bf16.mxu0 %v2360_v51  ;;  %v52_v51 = vld [vmem:[%s3366_s0 + $0xc8] sm:$0xff] }
  0x6a   :  { %1016 = vmatmul.mubr.bf16.gmra.mrb[20].mxu0 %v176_v56  ;;  %v2433_v56 = vld [vmem:[%s3367_s3 + $0x58] sm:$0xff]   ;;  %2044 = vmatpush3.bf16.msra.mxu1 %v2432_v54 }
  0x6b   :  { %1067 = vmatpush1.bf16.msra.mxu0 %v2358_v57  ;;  %1025 = vmatprep.mubr.bf16.mxu0 %v184_v58  ;;  %v67_v57 = vld [vmem:[%s3366_s0 + $0x140] sm:$0xff]  ;;  %v161_v58 = vpack.c.bf16 %v77_v52, %v70_v48  ;;  %v132_v52 = vld [vmem:[%s3366_s0 + $0x348] sm:$0xff]  ;;  %v122_v54 = vld [vmem:[%s3366_s0 + $0x2f8] sm:$0xff] }
  0x6c   :  { %1068 = vmatprep.subr.bf16.mxu0 %v2363_v59  ;;  %v150_v59 = vpack.c.bf16 %v52_v51, %v45_v50  ;;  %v158_v63 = vpack.c.bf16 %v67_v57, %v60_v53  ;;  %873 = vmatmul.mubr.bf16.gmra.mrb[8].mxu1 %v153_v55  ;;  %v125_v51 = vld [vmem:[%s3366_s0 + $0x310] sm:$0xff]  ;;  %v115_v53 = vld [vmem:[%s3366_s0 + $0x2c0] sm:$0xff] }
  0x6d   :  { %2045 = vmatprep.subr.bf16.mxu1 %v2433_v56  ;;  %882 = vmatprep.mubr.bf16.mxu1 %v161_v58  ;;  %v188_v55 = vpack.c.bf16 %v132_v52, %v125_v51  ;;  %v130_v56 = vld [vmem:[%s3366_s0 + $0x338] sm:$0xff]  ;;  %v137_v57 = vld [vmem:[%s3366_s0 + $0x370] sm:$0xff]  ;;  %v185_v58 = vpack.c.bf16 %v122_v54, %v115_v53 }
  0x6f   :  { %1069 = vmatpush1.bf16.msra.mxu0 %v2361_v62  ;;  %v2434_v62 = vld [vmem:[%s3367_s3 + $0x18] sm:$0xff]  }
  0x70   :  { %1070 = vmatprep.subr.bf16.mxu0 %v2366_v1  ;;  %v2435_v1 = vld [vmem:[%s3367_s3 + $0x60] sm:$0xff]   ;;  %2046 = vmatpush3.bf16.msra.mxu1 %v2434_v62 }
  0x71   :  { %2047 = vmatprep.subr.bf16.mxu1 %v2435_v1  ;;  %v40_v1 = vld [vmem:[%s3366_s0 + $0x68] sm:$0xff] }
  0x72   :  { %1026 = vmatmul.mubr.bf16.gmra.mrb[24].mxu0 %v183_v6  ;;  %v160_v6 = vpack.c.bf16 %v76_v61, %v69_v60  ;;  %v129_v60 = vld [vmem:[%s3366_s0 + $0x330] sm:$0xff]  ;;  %v136_v61 = vld [vmem:[%s3366_s0 + $0x368] sm:$0xff]  ;;  %v145_v2 = vpack.c.bf16 %v40_v1, %v33_v0 }
  0x73   :  { %1071 = vmatpush1.bf16.msra.mxu0 %v2364_v7  ;;  %1035 = vmatprep.mubr.bf16.mxu0 %v191_v9  ;;  %v2437_v7 = vld [vmem:[%s3367_s3 + $0x68] sm:$0xff]   ;;  %v81_v9 = vld [vmem:[%s3366_s0 + $0x1b0] sm:$0xff]  ;;  %v192_v62 = vpack.c.bf16 %v136_v61, %v129_v60 }
  0x74   :  { %1072 = vmatprep.subr.bf16.mxu0 %v2369_v8  ;;  %v74_v8 = vld [vmem:[%s3366_s0 + $0x178] sm:$0xff]  ;;  %2048 = vmatpush3.bf16.msra.mxu1 %v2436_v3  ;;  %v47_v3 = vld [vmem:[%s3366_s0 + $0xa0] sm:$0xff] }
  0x75   :  { %v165_v13 = vpack.c.bf16 %v81_v9, %v74_v8  ;;  %883 = vmatmul.mubr.bf16.gmra.mrb[12].mxu1 %v160_v6  ;;  %2049 = vmatprep.subr.bf16.mxu1 %v2437_v7  ;;  %v152_v5 = vpack.c.bf16 %v54_v4, %v47_v3  ;;  %v61_v6 = vld [vmem:[%s3366_s0 + $0x110] sm:$0xff]  ;;  %v68_v7 = vld [vmem:[%s3366_s0 + $0x148] sm:$0xff] }
  0x76   :  { %892 = vmatprep.mubr.bf16.mxu1 %v168_v10  ;;  %v2440_v8 = vld [vmem:[%s3367_s3 + $0x30] sm:$0xff]   ;;  %v159_v9 = vpack.c.bf16 %v68_v7, %v61_v6  ;;  %v75_v10 = vld [vmem:[%s3366_s0 + $0x180] sm:$0xff] }
  0x77   :  { %1073 = vmatpush1.bf16.msra.mxu0 %v2367_v15  ;;  %v83_v15 = vld [vmem:[%s3366_s0 + $0x1c0] sm:$0xff] }
  0x78   :  { %1074 = vmatprep.subr.bf16.mxu0 %v2372_v19  ;;  %2050 = vmatpush3.bf16.msra.mxu1 %v2438_v12  ;;  %v73_v19 = vld [vmem:[%s3366_s0 + $0x170] sm:$0xff]  ;;  %v167_v21 = vpack.c.bf16 %v90_v16, %v83_v15  ;;  %v103_v16 = vld [vmem:[%s3366_s0 + $0x260] sm:$0xff] }
  0x79   :  { %2051 = vmatprep.subr.bf16.mxu1 %v2439_v14  ;;  %v96_v14 = vld [vmem:[%s3366_s0 + $0x228] sm:$0xff] }
  0x7a   :  { %1036 = vmatmul.mubr.bf16.gmra.mrb[28].mxu0 %v190_v23  ;;  %v95_v23 = vld [vmem:[%s3366_s0 + $0x220] sm:$0xff] }
  0x7b   :  { %1075 = vmatpush1.bf16.msra.mxu0 %v2370_v24  ;;  %1078 = vmatprep.mubr.bf16.mxu0 %v144_v25  ;;  %v175_v24 = vpack.c.bf16 %v105_v18, %v98_v17  ;;  %v164_v25 = vpack.c.bf16 %v80_v20, %v73_v19  ;;  %v110_v17 = vld [vmem:[%s3366_s0 + $0x298] sm:$0xff]  ;;  %v117_v19 = vld [vmem:[%s3366_s0 + $0x2d0] sm:$0xff]  ;;  %v124_v20 = vld [vmem:[%s3366_s0 + $0x308] sm:$0xff] }
  0x7c   :  { %1076 = vmatprep.subr.bf16.mxu0 %v2377_v26  ;;  %v172_v26 = vpack.c.bf16 %v95_v23, %v88_v22  ;;  %2052 = vmatpush3.bf16.msra.mxu1 %v2440_v8  ;;  %v180_v18 = vpack.c.bf16 %v110_v17, %v103_v16  ;;  %v131_v22 = vld [vmem:[%s3366_s0 + $0x340] sm:$0xff]  ;;  %v138_v23 = vld [vmem:[%s3366_s0 + $0x378] sm:$0xff] }
  0x7d   :  { %893 = vmatmul.mubr.bf16.gmra.mrb[16].mxu1 %v167_v21  ;;  %v187_v21 = vpack.c.bf16 %v124_v20, %v117_v19 }
  0x7e   :  { %902 = vmatprep.mubr.bf16.mxu1 %v175_v24  ;;  %v194_v24 = vpack.c.bf16 %v138_v23, %v131_v22 }
  0x7f   :  { %1077 = vmatpush1.bf16.msra.mxu0 %v2375_v29  ;;  %v112_v29 = vld [vmem:[%s3366_s0 + $0x2a8] sm:$0xff] }
  0x80   :  { %1159 = vmatprep.subr.bf16.mxu0 %v2383_v34  ;;  %v102_v34 = vld [vmem:[%s3366_s0 + $0x258] sm:$0xff]  ;;  %v182_v36 = vpack.c.bf16 %v119_v30, %v112_v29 }
  0x81   :  { %v179_v38 = vpack.c.bf16 %v109_v35, %v102_v34  ;;  %v3181_v35 = vld [vmem:[%s3368_s5] sm:$0xff]  }
  0x82   :  { %1079 = vmatmul.mubr.bf16.vlgmr.msra.gmra.mrb[0].mxu0 %v143_v43  ;;  %v101_v43 = vld [vmem:[%s3366_s0 + $0x250] sm:$0xff] }
  0x83   :  { %1160 = vmatpush1.bf16.msra.mxu0 %v2381_v41  ;;  %1088 = vmatprep.mubr.bf16.mxu0 %v151_v47  ;;  %v126_v41 = vld [vmem:[%s3366_s0 + $0x318] sm:$0xff]  ;;  %v123_v47 = vld [vmem:[%s3366_s0 + $0x300] sm:$0xff]  ;;  %v178_v49 = vpack.c.bf16 %v108_v44, %v101_v43 }
  0x84   :  { %v189_v48 = vpack.c.bf16 %v133_v42, %v126_v41  ;;  %v186_v50 = vpack.c.bf16 %v123_v47, %v116_v46 }
  0x85   :  { %903 = vmatmul.mubr.bf16.gmra.mrb[20].mxu1 %v174_v33 }
  0x86   :  { %912 = vmatprep.mubr.bf16.mxu1 %v182_v36 }
  0x8a   :  { %1089 = vmatmul.mubr.bf16.gmra.mrb[4].mxu0 %v150_v59  ;;  %v193_v59 = vpack.c.bf16 %v137_v57, %v130_v56  ;;  %v295_v56 = vlaneseq }
  0x8b   :  { %1098 = vmatprep.mubr.bf16.mxu0 %v158_v63  ;;  %v2451_v63 = vmov 0  }
  0x8c   :  { %v296_v61 = vshrl.u32 %v295_v56, 7 }
  0x8d   :  { %913 = vmatmul.mubr.bf16.gmra.mrb[24].mxu1 %v181_v45 }
  0x8e   :  { %922 = vmatprep.mubr.bf16.mxu1 %v189_v48  ;;  %v301_v0 = vsub.s32 1, %v296_v61 }
  0x92   :  { %1099 = vmatmul.mubr.bf16.gmra.mrb[8].mxu0 %v157_v11  ;;  %v82_v11 = vld [vmem:[%s3366_s0 + $0x1b8] sm:$0xff] }
  0x93   :  { %1108 = vmatprep.mubr.bf16.mxu0 %v165_v13  ;;  %v166_v12 = vpack.c.bf16 %v82_v11, %v75_v10  ;;  %v89_v13 = vld [vmem:[%s3366_s0 + $0x1f0] sm:$0xff] }
  0x94   :  { %v173_v15 = vpack.c.bf16 %v96_v14, %v89_v13 }
  0x95   :  { %923 = vmatmul.mubr.bf16.gmra.mrb[28].mxu1 %v188_v55 }
  0x9a   :  { %1109 = vmatmul.mubr.bf16.gmra.mrb[12].mxu0 %v164_v25  ;;  %v2441_v25 = vld [vmem:[%s3367_s3 + $0x78] sm:$0xff]  }
  0x9b   :  { %1118 = vmatprep.mubr.bf16.mxu0 %v172_v26  ;;  %v2442_v26 = vld [vmem:[%s3367_s3 + $0x38] sm:$0xff]   ;;  %2053 = vmatprep.subr.bf16.mxu1 %v2441_v25 }
  0x9c   :  { %2054 = vmatpush3.bf16.msra.mxu1 %v2442_v26 }
  0x9d   :  { %2119 = vmatprep.subr.bf16.mxu1 %v3181_v35 }
  0xa2   :  { %1119 = vmatmul.mubr.bf16.gmra.mrb[16].mxu0 %v171_v37 }
  0xa3   :  { %1128 = vmatprep.mubr.bf16.mxu0 %v179_v38 }
  0xaa   :  { %1129 = vmatmul.mubr.bf16.gmra.mrb[20].mxu0 %v178_v49 }
  0xab   :  { %1138 = vmatprep.mubr.bf16.mxu0 %v186_v50 }
  0xb2   :  { %1139 = vmatmul.mubr.bf16.gmra.mrb[24].mxu0 %v185_v58 }
  0xb3   :  { %1148 = vmatprep.mubr.bf16.mxu0 %v193_v59 }
  0xba   :  { %1149 = vmatmul.mubr.bf16.gmra.mrb[28].mxu0 %v192_v62  ;;  %v297_v62 = vsub.s32 0, %v296_v61 }
  0xbb   :  { %1191 = vmatprep.mubr.bf16.mxu0 %v2451_v63 }
  0xc2   :  { %1926 = vmatmul.mubr.msk.bf16.vlgmr.msra.gmra.mrb[0].mxu0 %vm795_vm0, %v145_v2 }
  0xc3   :  { %1201 = vmatprep.mubr.bf16.mxu0 %v2451_v63 }
  0xca   :  { %1927 = vmatmul.mubr.msk.bf16.gmra.mrb[4].mxu0 %vm795_vm0, %v152_v5 }
  0xcb   :  { %1211 = vmatprep.mubr.bf16.mxu0 %v2451_v63 }
  0xd2   :  { %1928 = vmatmul.mubr.msk.bf16.gmra.mrb[8].mxu0 %vm795_vm0, %v159_v9 }
  0xd3   :  { %1221 = vmatprep.mubr.bf16.mxu0 %v2451_v63 }
  0xda   :  { %1929 = vmatmul.mubr.msk.bf16.gmra.mrb[12].mxu0 %vm795_vm0, %v166_v12 }
  0xdb   :  { %1231 = vmatprep.mubr.bf16.mxu0 %v2451_v63 }
  0xe2   :  { %1930 = vmatmul.mubr.msk.bf16.gmra.mrb[16].mxu0 %vm795_vm0, %v173_v15 }
  0xe3   :  { %1241 = vmatprep.mubr.bf16.mxu0 %v2451_v63 }
  0xea   :  { %1931 = vmatmul.mubr.msk.bf16.gmra.mrb[20].mxu0 %vm795_vm0, %v180_v18 }
  0xeb   :  { %1251 = vmatprep.mubr.bf16.mxu0 %v2451_v63 }
  0xf2   :  { %1932 = vmatmul.mubr.msk.bf16.gmra.mrb[24].mxu0 %vm795_vm0, %v187_v21 }
  0xf3   :  { %1261 = vmatprep.mubr.bf16.mxu0 %v2451_v63  ;;  %v293_v63 = vld [vmem:[%s3369_s2] sm:$0x3] }
  0xf4   :  { %v3235_v1 = vrot.slane %v293_v63, %v297_v62  ;;  %v3237_v2 = vrot.slane %v293_v63, %v301_v0  ;;  %v2445_v63 = vld [vmem:[%s3368_s5 + $0x10] sm:$0xff]  }
  0xfa   :  { %1933 = vmatmul.mubr.msk.bf16.gmra.mrb[28].mxu0 %vm795_vm0, %v194_v24 }
 0x12b   :  { %v854_v27 = vpop.f32.mrb[0].mxu1 }
 0x12c   :  { %v856_v28 = vpop.f32.mrb[1].mxu1  ;;  %v855_v3 = vadd.f32 %v854_v27, %v3235_v1  ;;  %v2444_v27 = vld [vmem:[%s3368_s5 + $0x8] sm:$0xff]  }
 0x12d   :  { %v858_v29 = vpop.f32.mrb[2].mxu1  ;;  %v857_v4 = vadd.f32 %v856_v28, %v3237_v2 }
 0x12e   :  { %v860_v30 = vpop.f32.mrb[3].mxu1  ;;  %v859_v6 = vadd.f32 %v858_v29, %v3235_v1 }
 0x12f   :  { %v861_v9 = vadd.f32 %v860_v30, %v3237_v2 }
 0x135   :  { %v864_v31 = vpop.f32.mrb[4].mxu1 }
 0x136   :  { %v866_v32 = vpop.f32.mrb[5].mxu1  ;;  %v865_v17 = vadd.f32 %v864_v31, %v3235_v1 }
 0x137   :  { %v868_v33 = vpop.f32.mrb[6].mxu1  ;;  %v867_v20 = vadd.f32 %v866_v32, %v3237_v2 }
 0x138   :  { %v870_v34 = vpop.f32.mrb[7].mxu1  ;;  %v869_v24 = vadd.f32 %v868_v33, %v3235_v1 }
 0x139   :  { %v871_v28 = vadd.f32 %v870_v34, %v3237_v2 }
 0x13f   :  { %v3183_v36 = vpop.f32.mrb[8].mxu1 }
 0x140   :  { %v3185_v37 = vpop.f32.mrb[9].mxu1  ;;  %v875_v33 = vadd.f32 %v3183_v36, %v3235_v1 }
 0x141   :  { %v3188_v38 = vpop.f32.mrb[10].mxu1 }
 0x142   :  { %v3190_v39 = vpop.f32.mrb[11].mxu1 }
 0x143   :  { %v881_v36 = vadd.f32 %v3190_v39, %v3237_v2 }
 0x148   :  { %v3192_v40 = vpop.f32.mrb[12].mxu1 }
 0x149   :  { %v3194_v41 = vpop.f32.mrb[13].mxu1 }
 0x14a   :  { %v3196_v42 = vpop.f32.mrb[14].mxu1 }
 0x14b   :  { %v3198_v43 = vpop.f32.mrb[15].mxu1 }
 0x150   :  { %v3200_v44 = vpop.f32.mrb[16].mxu1 }
 0x151   :  { %v3202_v45 = vpop.f32.mrb[17].mxu1 }
 0x152   :  { %v3204_v46 = vpop.f32.mrb[18].mxu1 }
 0x153   :  { %v3206_v47 = vpop.f32.mrb[19].mxu1 }
 0x158   :  { %v3208_v48 = vpop.f32.mrb[20].mxu1 }
 0x159   :  { %v3210_v49 = vpop.f32.mrb[21].mxu1 }
 0x15a   :  { %v3212_v50 = vpop.f32.mrb[22].mxu1 }
 0x15b   :  { %v3214_v51 = vpop.f32.mrb[23].mxu1 }
 0x160   :  { %v3216_v52 = vpop.f32.mrb[24].mxu1 }
 0x161   :  { %v3218_v53 = vpop.f32.mrb[25].mxu1 }
 0x162   :  { %v3220_v54 = vpop.f32.mrb[26].mxu1 }
 0x163   :  { %v3222_v55 = vpop.f32.mrb[27].mxu1 }
 0x168   :  { %v3224_v57 = vpop.f32.mrb[28].mxu1 }
 0x169   :  { %v3226_v58 = vpop.f32.mrb[29].mxu1 }
 0x16a   :  { %v3228_v59 = vpop.f32.mrb[30].mxu1 }
 0x16b   :  { %v3230_v60 = vpop.f32.mrb[31].mxu1 }
 0x195   :  { %v1193_v5 = vpop.f32.mrb[0].mxu0 }
 0x196   :  { %v2152_v7 = vadd.f32 %v1193_v5, %v855_v3  ;;  %v1195_v8 = vpop.f32.mrb[1].mxu0  ;;  %v877_v3 = vadd.f32 %v3185_v37, %v3237_v2 }
 0x197   :  { %v2154_v10 = vadd.f32 %v1195_v8, %v857_v4  ;;  %v1197_v11 = vpop.f32.mrb[2].mxu0 }
 0x198   :  { %v2156_v12 = vadd.f32 %v1197_v11, %v859_v6  ;;  %v1199_v13 = vpop.f32.mrb[3].mxu0  ;;  %v1272_v15 = vmax.f32 %v2152_v7, 0.0 }
 0x199   :  { %v2158_v14 = vadd.f32 %v1199_v13, %v861_v9  ;;  %v1273_v18 = vmax.f32 %v2154_v10, 0.0 }
 0x19a   :  { %v1274_v16 = vmax.f32 %v2156_v12, 0.0 }
 0x19b   :  { %v1275_v19 = vmax.f32 %v2158_v14, 0.0 }
 0x19c   :  { %v1304_v21 = vpack.c.bf16 %v1274_v16, %v1272_v15  ;;  %v885_v15 = vadd.f32 %v3192_v40, %v3235_v1 }
 0x19d   :  { %v1305_v22 = vpack.c.bf16 %v1275_v19, %v1273_v18  ;;  %v1203_v23 = vpop.f32.mrb[4].mxu0 }
 0x19e   :  { %v2160_v25 = vadd.f32 %v1203_v23, %v865_v17  ;;  %v1205_v26 = vpop.f32.mrb[5].mxu0  ;;  %v887_v17 = vadd.f32 %v3194_v41, %v3237_v2  ;;  %v891_v23 = vadd.f32 %v3198_v43, %v3237_v2 }
 0x19f   :  { %v2162_v29 = vadd.f32 %v1205_v26, %v867_v20  ;;  %v1207_v30 = vpop.f32.mrb[6].mxu0  ;;  %1487 = vmatprep.mubr.bf16.mxu1 %v1305_v22  ;;  %v889_v20 = vadd.f32 %v3196_v42, %v3235_v1  ;;  %v897_v42 = vadd.f32 %v3202_v45, %v3237_v2 }
 0x1a0   :  { %v2164_v31 = vadd.f32 %v1207_v30, %v869_v24  ;;  %v1209_v56 = vpop.f32.mrb[7].mxu0  ;;  %1488 = vmatmul.mubr.bf16.vlgmr.msra.gmra.mrb[32].mxu1 %v1304_v21  ;;  %v1276_v61 = vmax.f32 %v2160_v25, 0.0 }
 0x1a1   :  { %v2166_v32 = vadd.f32 %v1209_v56, %v871_v28  ;;  %2120 = vmatpush3.bf16.msra.mxu1 %v3181_v35  ;;  %v1277_v34 = vmax.f32 %v2162_v29, 0.0  ;;  %v879_v35 = vadd.f32 %v3188_v38, %v3235_v1  ;;  %v895_v29 = vadd.f32 %v3200_v44, %v3235_v1 }
 0x1a2   :  { %v1278_v62 = vmax.f32 %v2164_v31, 0.0  ;;  %2121 = vmatprep.subr.bf16.mxu1 %v2444_v27 }
 0x1a3   :  { %v1279_v0 = vmax.f32 %v2166_v32, 0.0 }
 0x1a4   :  { %v1306_v4 = vpack.c.bf16 %v1278_v62, %v1276_v61  ;;  %v899_v61 = vadd.f32 %v3204_v46, %v3235_v1  ;;  %v907_v46 = vadd.f32 %v3210_v49, %v3237_v2 }
 0x1a5   :  { %v1307_v5 = vpack.c.bf16 %v1279_v0, %v1277_v34  ;;  %v1213_v6 = vpop.f32.mrb[8].mxu0  ;;  %2122 = vmatpush3.bf16.msra.mxu1 %v2444_v27 }
 0x1a6   :  { %v2168_v7 = vadd.f32 %v1213_v6, %v875_v33  ;;  %v1215_v8 = vpop.f32.mrb[9].mxu0  ;;  %2123 = vmatprep.subr.bf16.mxu1 %v2445_v63  ;;  %v905_v6 = vadd.f32 %v3208_v48, %v3235_v1 }
 0x1a7   :  { %v2170_v9 = vadd.f32 %v1215_v8, %v877_v3  ;;  %v1217_v10 = vpop.f32.mrb[10].mxu0  ;;  %1495 = vmatprep.mubr.bf16.mxu1 %v1307_v5 }
 0x1a8   :  { %v2172_v11 = vadd.f32 %v1217_v10, %v879_v35  ;;  %v1219_v12 = vpop.f32.mrb[11].mxu0  ;;  %1496 = vmatmul.mubr.bf16.gmra.mrb[36].mxu1 %v1306_v4  ;;  %v1280_v13 = vmax.f32 %v2168_v7, 0.0 }
 0x1a9   :  { %v2174_v37 = vadd.f32 %v1219_v12, %v881_v36  ;;  %2124 = vmatpush3.bf16.msra.mxu1 %v2445_v63  ;;  %v1281_v38 = vmax.f32 %v2170_v9, 0.0  ;;  %v901_v63 = vadd.f32 %v3206_v47, %v3237_v2  ;;  %v909_v9 = vadd.f32 %v3212_v50, %v3235_v1 }
 0x1aa   :  { %v1282_v14 = vmax.f32 %v2172_v11, 0.0  ;;  %v911_v12 = vadd.f32 %v3214_v51, %v3237_v2  ;;  %v917_v50 = vadd.f32 %v3218_v53, %v3237_v2 }
 0x1ab   :  { %v1283_v16 = vmax.f32 %v2174_v37, 0.0 }
 0x1ac   :  { %v1308_v18 = vpack.c.bf16 %v1282_v14, %v1280_v13 }
 0x1ad   :  { %v1309_v39 = vpack.c.bf16 %v1283_v16, %v1281_v38  ;;  %v1223_v19 = vpop.f32.mrb[12].mxu0  ;;  %v915_v16 = vadd.f32 %v3216_v52, %v3235_v1 }
 0x1ae   :  { %v2176_v21 = vadd.f32 %v1223_v19, %v885_v15  ;;  %v1225_v22 = vpop.f32.mrb[13].mxu0 }
 0x1af   :  { %v2178_v24 = vadd.f32 %v1225_v22, %v887_v17  ;;  %v1227_v25 = vpop.f32.mrb[14].mxu0  ;;  %1503 = vmatprep.mubr.bf16.mxu1 %v1309_v39 }
 0x1b0   :  { %v2180_v40 = vadd.f32 %v1227_v25, %v889_v20  ;;  %v1229_v26 = vpop.f32.mrb[15].mxu0  ;;  %1504 = vmatmul.mubr.bf16.gmra.mrb[40].mxu1 %v1308_v18  ;;  %v1284_v28 = vmax.f32 %v2176_v21, 0.0  ;;  %v919_v20 = vadd.f32 %v3220_v54, %v3235_v1  ;;  %v927_v54 = vadd.f32 %v3226_v58, %v3237_v2 }
 0x1b1   :  { %v2182_v27 = vadd.f32 %v1229_v26, %v891_v23  ;;  %v1285_v30 = vmax.f32 %v2178_v24, 0.0  ;;  %v921_v23 = vadd.f32 %v3222_v55, %v3237_v2 }
 0x1b2   :  { %v1286_v41 = vmax.f32 %v2180_v40, 0.0 }
 0x1b3   :  { %v1287_v31 = vmax.f32 %v2182_v27, 0.0 }
 0x1b4   :  { %v1310_v56 = vpack.c.bf16 %v1286_v41, %v1284_v28  ;;  %v925_v28 = vadd.f32 %v3224_v57, %v3235_v1 }
 0x1b5   :  { %v1311_v32 = vpack.c.bf16 %v1287_v31, %v1285_v30  ;;  %v1233_v43 = vpop.f32.mrb[16].mxu0 }
 0x1b6   :  { %v2184_v62 = vadd.f32 %v1233_v43, %v895_v29  ;;  %v1235_v33 = vpop.f32.mrb[17].mxu0  ;;  %v931_v43 = vadd.f32 %v3230_v60, %v3237_v2  ;;  %v2447_v60 = vld [vmem:[%s3368_s5 + $0x20] sm:$0xff]   ;;  %v2449_v2 = vld [vmem:[%s3368_s5 + $0x30] sm:$0xff]  }
 0x1b7   :  { %v2186_v34 = vadd.f32 %v1235_v33, %v897_v42  ;;  %v1237_v0 = vpop.f32.mrb[18].mxu0  ;;  %1511 = vmatprep.mubr.bf16.mxu1 %v1311_v32  ;;  %v929_v42 = vadd.f32 %v3228_v59, %v3235_v1  ;;  %v2446_v59 = vld [vmem:[%s3368_s5 + $0x18] sm:$0xff]   ;;  %v2448_v1 = vld [vmem:[%s3368_s5 + $0x28] sm:$0xff]  }
 0x1b8   :  { %v2188_v44 = vadd.f32 %v1237_v0, %v899_v61  ;;  %v1239_v3 = vpop.f32.mrb[19].mxu0  ;;  %1512 = vmatmul.mubr.bf16.gmra.mrb[44].mxu1 %v1310_v56  ;;  %v1288_v5 = vmax.f32 %v2184_v62, 0.0  ;;  %2125 = vmatprep.subr.bf16.mxu1 %v2446_v59 }
 0x1b9   :  { %v2190_v4 = vadd.f32 %v1239_v3, %v901_v63  ;;  %v1289_v35 = vmax.f32 %v2186_v34, 0.0  ;;  %2126 = vmatpush3.bf16.msra.mxu1 %v2446_v59 }
 0x1ba   :  { %v1290_v45 = vmax.f32 %v2188_v44, 0.0  ;;  %2127 = vmatprep.subr.bf16.mxu1 %v2447_v60 }
 0x1bb   :  { %v1291_v7 = vmax.f32 %v2190_v4, 0.0 }
 0x1bc   :  { %v1312_v8 = vpack.c.bf16 %v1290_v45, %v1288_v5  ;;  %v2450_v5 = vld [vmem:[%s3368_s5 + $0x38] sm:$0xff]  }
 0x1bd   :  { %v1313_v36 = vpack.c.bf16 %v1291_v7, %v1289_v35  ;;  %v1243_v47 = vpop.f32.mrb[20].mxu0  ;;  %2128 = vmatpush3.bf16.msra.mxu1 %v2447_v60 }
 0x1be   :  { %v2192_v10 = vadd.f32 %v1243_v47, %v905_v6  ;;  %v1245_v11 = vpop.f32.mrb[21].mxu0  ;;  %2129 = vmatprep.subr.bf16.mxu1 %v2448_v1  ;;  %v3320_v6 = vld [vmem:[%s3370_s4] ss:$0 sm:$0xff] }
 0x1bf   :  { %v2194_v37 = vadd.f32 %v1245_v11, %v907_v46  ;;  %v1247_v13 = vpop.f32.mrb[22].mxu0  ;;  %1519 = vmatprep.mubr.bf16.mxu1 %v1313_v36 }
 0x1c0   :  { %v2196_v48 = vadd.f32 %v1247_v13, %v909_v9  ;;  %v1249_v14 = vpop.f32.mrb[23].mxu0  ;;  %1520 = vmatmul.mubr.bf16.gmra.mrb[48].mxu1 %v1312_v8  ;;  %v1292_v38 = vmax.f32 %v2192_v10, 0.0 }
 0x1c1   :  { %v2198_v15 = vadd.f32 %v1249_v14, %v911_v12  ;;  %v1293_v17 = vmax.f32 %v2194_v37, 0.0  ;;  %2130 = vmatpush3.bf16.msra.mxu1 %v2448_v1 }
 0x1c2   :  { %v1294_v49 = vmax.f32 %v2196_v48, 0.0  ;;  %2131 = vmatprep.subr.bf16.mxu1 %v2449_v2 }
 0x1c3   :  { %v1295_v18 = vmax.f32 %v2198_v15, 0.0 }
 0x1c4   :  { %v1314_v39 = vpack.c.bf16 %v1294_v49, %v1292_v38 }
 0x1c5   :  { %v1315_v19 = vpack.c.bf16 %v1295_v18, %v1293_v17  ;;  %v1253_v51 = vpop.f32.mrb[24].mxu0  ;;  %2132 = vmatpush3.bf16.msra.mxu1 %v2449_v2 }
 0x1c6   :  { %v2200_v21 = vadd.f32 %v1253_v51, %v915_v16  ;;  %v1255_v22 = vpop.f32.mrb[25].mxu0  ;;  %2133 = vmatprep.subr.bf16.mxu1 %v2450_v5 }
 0x1c7   :  { %v2202_v24 = vadd.f32 %v1255_v22, %v917_v50  ;;  %v1257_v25 = vpop.f32.mrb[26].mxu0  ;;  %1527 = vmatprep.mubr.bf16.mxu1 %v1315_v19 }
 0x1c8   :  { %v2204_v52 = vadd.f32 %v1257_v25, %v919_v20  ;;  %v1259_v40 = vpop.f32.mrb[27].mxu0  ;;  %1528 = vmatmul.mubr.bf16.gmra.mrb[52].mxu1 %v1314_v39  ;;  %v1296_v27 = vmax.f32 %v2200_v21, 0.0 }
 0x1c9   :  { %v2206_v26 = vadd.f32 %v1259_v40, %v921_v23  ;;  %v1297_v41 = vmax.f32 %v2202_v24, 0.0  ;;  %2134 = vmatpush3.bf16.msra.mxu1 %v2450_v5 }
 0x1ca   :  { %v1298_v53 = vmax.f32 %v2204_v52, 0.0 }
 0x1cb   :  { %v1299_v29 = vmax.f32 %v2206_v26, 0.0 }
 0x1cc   :  { %v1316_v30 = vpack.c.bf16 %v1298_v53, %v1296_v27 }
 0x1cd   :  { %v1317_v31 = vpack.c.bf16 %v1299_v29, %v1297_v41  ;;  %v1263_v55 = vpop.f32.mrb[28].mxu0 }
 0x1ce   :  { %v2208_v56 = vadd.f32 %v1263_v55, %v925_v28  ;;  %v1265_v32 = vpop.f32.mrb[29].mxu0 }
 0x1cf   :  { %v2210_v61 = vadd.f32 %v1265_v32, %v927_v54  ;;  %v1267_v62 = vpop.f32.mrb[30].mxu0  ;;  %1535 = vmatprep.mubr.bf16.mxu1 %v1317_v31 }
 0x1d0   :  { %v2212_v57 = vadd.f32 %v1267_v62, %v929_v42  ;;  %v1269_v33 = vpop.f32.mrb[31].mxu0  ;;  %1536 = vmatmul.mubr.bf16.gmra.mrb[56].mxu1 %v1316_v30  ;;  %v1300_v34 = vmax.f32 %v2208_v56, 0.0 }
 0x1d1   :  { %v2214_v63 = vadd.f32 %v1269_v33, %v931_v43  ;;  %v1301_v0 = vmax.f32 %v2210_v61, 0.0 }
 0x1d2   :  { %v1302_v58 = vmax.f32 %v2212_v57, 0.0 }
 0x1d3   :  { %v1303_v44 = vmax.f32 %v2214_v63, 0.0 }
 0x1d4   :  { %v1318_v3 = vpack.c.bf16 %v1302_v58, %v1300_v34 }
 0x1d5   :  { %v1319_v4 = vpack.c.bf16 %v1303_v44, %v1301_v0 }
 0x1d7   :  { %1543 = vmatprep.mubr.bf16.mxu1 %v1319_v4 }
 0x1d8   :  { %1544 = vmatmul.mubr.bf16.gmra.mrb[60].mxu1 %v1318_v3 }
 0x273   :  { %v2055_v45 = vpop.f32.mrb[32].mxu1 }
 0x274   :  { %v2056_v35 = vpop.f32.mrb[33].mxu1 }
 0x275   :  { %v2057_v7 = vadd.f32 %v2056_v35, %v2055_v45  ;;  %v2058_v46 = vpop.f32.mrb[34].mxu1 }
 0x276   :  { %v2059_v8 = vpop.f32.mrb[35].mxu1 }
 0x277   :  { %v1490_v36 = vadd.f32 %v2057_v7, %v3320_v6  ;;  %v2060_v47 = vadd.f32 %v2059_v8, %v2058_v46 }
 0x279   :  { %v1493_v9 = vadd.f32 %v2060_v47, %v3320_v6  ;;  %v1552_v10 = vmax.f32 %v1490_v36, 0.0 }
 0x27b   :  { %v1553_v11 = vmax.f32 %v1493_v9, 0.0  ;;  %v2061_v12 = vpop.f32.mrb[36].mxu1 }
 0x27c   :  { %v2062_v37 = vpop.f32.mrb[37].mxu1 }
 0x27d   :  { %v2063_v13 = vadd.f32 %v2062_v37, %v2061_v12  ;;  %v2064_v48 = vpop.f32.mrb[38].mxu1  ;;  %v1568_v14 = vpack.c.bf16 %v1553_v11, %v1552_v10 }
 0x27e   :  { %v2065_v15 = vpop.f32.mrb[39].mxu1 }
 0x27f   :  { %v1498_v38 = vadd.f32 %v2063_v13, %v3320_v6  ;;  %v2066_v49 = vadd.f32 %v2065_v15, %v2064_v48  ;;  %2135 = vmatprep.mubr.bf16.mxu1 %v1568_v14 }
 0x281   :  { %v1501_v16 = vadd.f32 %v2066_v49, %v3320_v6  ;;  %v1554_v17 = vmax.f32 %v1498_v38, 0.0 }
 0x283   :  { %v1555_v18 = vmax.f32 %v1501_v16, 0.0  ;;  %v2067_v50 = vpop.f32.mrb[40].mxu1 }
 0x284   :  { %v2068_v39 = vpop.f32.mrb[41].mxu1 }
 0x285   :  { %v1569_v19 = vpack.c.bf16 %v1555_v18, %v1554_v17  ;;  %v2069_v51 = vadd.f32 %v2068_v39, %v2067_v50  ;;  %v2070_v20 = vpop.f32.mrb[42].mxu1 }
 0x286   :  { %v2071_v21 = vpop.f32.mrb[43].mxu1 }
 0x287   :  { %v1506_v22 = vadd.f32 %v2069_v51, %v3320_v6  ;;  %v2072_v23 = vadd.f32 %v2071_v21, %v2070_v20  ;;  %2136 = vmatmul.mubr.bf16.vlgmr.msra.gmra.mrb[64].mxu1 %v1569_v19  ;;  %v1951_v21 = vld [vmem:[%s3371_s6] ss:$0 sm:$0xff] }
 0x289   :  { %v1509_v24 = vadd.f32 %v2072_v23, %v3320_v6  ;;  %v1556_v25 = vmax.f32 %v1506_v22, 0.0 }
 0x28b   :  { %v1557_v52 = vmax.f32 %v1509_v24, 0.0  ;;  %v2073_v40 = vpop.f32.mrb[44].mxu1 }
 0x28c   :  { %v2074_v26 = vpop.f32.mrb[45].mxu1 }
 0x28d   :  { %v2075_v27 = vadd.f32 %v2074_v26, %v2073_v40  ;;  %v2076_v53 = vpop.f32.mrb[46].mxu1  ;;  %v1570_v28 = vpack.c.bf16 %v1557_v52, %v1556_v25 }
 0x28e   :  { %v2077_v41 = vpop.f32.mrb[47].mxu1 }
 0x28f   :  { %v1514_v29 = vadd.f32 %v2075_v27, %v3320_v6  ;;  %v2078_v54 = vadd.f32 %v2077_v41, %v2076_v53  ;;  %2139 = vmatprep.mubr.bf16.mxu1 %v1570_v28 }
 0x291   :  { %v1517_v30 = vadd.f32 %v2078_v54, %v3320_v6  ;;  %v1558_v31 = vmax.f32 %v1514_v29, 0.0 }
 0x293   :  { %v1559_v55 = vmax.f32 %v1517_v30, 0.0  ;;  %v2079_v42 = vpop.f32.mrb[48].mxu1 }
 0x294   :  { %v2080_v56 = vpop.f32.mrb[49].mxu1 }
 0x295   :  { %v2081_v32 = vadd.f32 %v2080_v56, %v2079_v42  ;;  %v2082_v43 = vpop.f32.mrb[50].mxu1  ;;  %v1571_v61 = vpack.c.bf16 %v1559_v55, %v1558_v31 }
 0x296   :  { %v2083_v62 = vpop.f32.mrb[51].mxu1 }
 0x297   :  { %v1522_v57 = vadd.f32 %v2081_v32, %v3320_v6  ;;  %v2084_v33 = vadd.f32 %v2083_v62, %v2082_v43  ;;  %2140 = vmatmul.mubr.bf16.gmra.mrb[68].mxu1 %v1571_v61 }
 0x299   :  { %v1525_v63 = vadd.f32 %v2084_v33, %v3320_v6  ;;  %v1560_v34 = vmax.f32 %v1522_v57, 0.0 }
 0x29b   :  { %v1561_v58 = vmax.f32 %v1525_v63, 0.0  ;;  %v2085_v0 = vpop.f32.mrb[52].mxu1 }
 0x29c   :  { %v2086_v44 = vpop.f32.mrb[53].mxu1 }
 0x29d   :  { %v2087_v3 = vadd.f32 %v2086_v44, %v2085_v0  ;;  %v2088_v4 = vpop.f32.mrb[54].mxu1  ;;  %v1572_v59 = vpack.c.bf16 %v1561_v58, %v1560_v34 }
 0x29e   :  { %v2089_v60 = vpop.f32.mrb[55].mxu1 }
 0x29f   :  { %v1530_v1 = vadd.f32 %v2087_v3, %v3320_v6  ;;  %v2090_v2 = vadd.f32 %v2089_v60, %v2088_v4  ;;  %2143 = vmatprep.mubr.bf16.mxu1 %v1572_v59 }
 0x2a1   :  { %v1533_v5 = vadd.f32 %v2090_v2, %v3320_v6  ;;  %v1562_v45 = vmax.f32 %v1530_v1, 0.0 }
 0x2a3   :  { %v1563_v35 = vmax.f32 %v1533_v5, 0.0  ;;  %v2091_v7 = vpop.f32.mrb[56].mxu1 }
 0x2a4   :  { %v2092_v46 = vpop.f32.mrb[57].mxu1 }
 0x2a5   :  { %v2093_v8 = vadd.f32 %v2092_v46, %v2091_v7  ;;  %v2094_v36 = vpop.f32.mrb[58].mxu1  ;;  %v1573_v47 = vpack.c.bf16 %v1563_v35, %v1562_v45 }
 0x2a6   :  { %v2095_v9 = vpop.f32.mrb[59].mxu1 }
 0x2a7   :  { %v1538_v10 = vadd.f32 %v2093_v8, %v3320_v6  ;;  %v2096_v11 = vadd.f32 %v2095_v9, %v2094_v36  ;;  %2144 = vmatmul.mubr.bf16.gmra.mrb[72].mxu1 %v1573_v47 }
 0x2a9   :  { %v1541_v12 = vadd.f32 %v2096_v11, %v3320_v6  ;;  %v1564_v37 = vmax.f32 %v1538_v10, 0.0 }
 0x2ab   :  { %v1565_v13 = vmax.f32 %v1541_v12, 0.0  ;;  %v2097_v48 = vpop.f32.mrb[60].mxu1 }
 0x2ac   :  { %v2098_v14 = vpop.f32.mrb[61].mxu1 }
 0x2ad   :  { %v2099_v15 = vadd.f32 %v2098_v14, %v2097_v48  ;;  %v2100_v38 = vpop.f32.mrb[62].mxu1  ;;  %v1574_v49 = vpack.c.bf16 %v1565_v13, %v1564_v37 }
 0x2ae   :  { %v2101_v16 = vpop.f32.mrb[63].mxu1 }
 0x2af   :  { %v1546_v17 = vadd.f32 %v2099_v15, %v3320_v6  ;;  %v2102_v18 = vadd.f32 %v2101_v16, %v2100_v38  ;;  %2147 = vmatprep.mubr.bf16.mxu1 %v1574_v49 }
 0x2b1   :  { %v1549_v50 = vadd.f32 %v2102_v18, %v3320_v6  ;;  %v1566_v39 = vmax.f32 %v1546_v17, 0.0 }
 0x2b3   :  { %v1567_v19 = vmax.f32 %v1549_v50, 0.0 }
 0x2b5   :  { %v1575_v51 = vpack.c.bf16 %v1567_v19, %v1566_v39 }
 0x2b7   :  { %2148 = vmatmul.mubr.bf16.gmra.mrb[76].mxu1 %v1575_v51 }
 0x35a   :  { %v2137_v20 = vpop.f32.mrb[64].mxu1 }
 0x35b   :  { %v1681_v22 = vpop.f32.mrb[65].mxu1  ;;  %v1690_v24 = vadd.f32 %v2137_v20, %v1951_v21 }
 0x35c   :  { %v2138_v23 = vpop.f32.mrb[66].mxu1  ;;  %v1682_v40 = vadd.f32 %v1951_v21, %v1681_v22 }
 0x35d   :  { %v1693_v25 = vadd.f32 %v2138_v23, %v1951_v21  ;;  %v1684_v52 = vpop.f32.mrb[67].mxu1 }
 0x35e   :  { %v1685_v26 = vadd.f32 %v1951_v21, %v1684_v52 }
 0x35f   :  { %v2000_v27 = vpack.c.bf16 %v1693_v25, %v1690_v24 }
 0x360   :  { %v1995_v53 = vpack.c.bf16 %v1685_v26, %v1682_v40 }
 0x361   :  { %2032 = vst [vmem:[%s3372_s7 + $0x8] sm:$0xff] %v2000_v27  }
 0x362   :  { %1996 = vst [vmem:[%s3372_s7] sm:$0xff] %v1995_v53  }
 0x36a   :  { %v2141_v6 = vpop.f32.mrb[68].mxu1 }
 0x36b   :  { %v1697_v28 = vpop.f32.mrb[69].mxu1  ;;  %v1706_v29 = vadd.f32 %v2141_v6, %v1951_v21 }
 0x36c   :  { %v2142_v41 = vpop.f32.mrb[70].mxu1  ;;  %v1698_v31 = vadd.f32 %v1951_v21, %v1697_v28 }
 0x36d   :  { %v1709_v54 = vadd.f32 %v2142_v41, %v1951_v21  ;;  %v1700_v30 = vpop.f32.mrb[71].mxu1 }
 0x36e   :  { %v1701_v55 = vadd.f32 %v1951_v21, %v1700_v30 }
 0x36f   :  { %v2010_v42 = vpack.c.bf16 %v1709_v54, %v1706_v29 }
 0x370   :  { %v2005_v56 = vpack.c.bf16 %v1701_v55, %v1698_v31 }
 0x371   :  { %2034 = vst [vmem:[%s3372_s7 + $0x18] sm:$0xff] %v2010_v42  }
 0x372   :  { %2033 = vst [vmem:[%s3372_s7 + $0x10] sm:$0xff] %v2005_v56  }
 0x37a   :  { %v2145_v32 = vpop.f32.mrb[72].mxu1 }
 0x37b   :  { %v1713_v43 = vpop.f32.mrb[73].mxu1  ;;  %v1722_v62 = vadd.f32 %v2145_v32, %v1951_v21 }
 0x37c   :  { %v2146_v61 = vpop.f32.mrb[74].mxu1  ;;  %v1714_v63 = vadd.f32 %v1951_v21, %v1713_v43 }
 0x37d   :  { %v1725_v57 = vadd.f32 %v2146_v61, %v1951_v21  ;;  %v1716_v33 = vpop.f32.mrb[75].mxu1 }
 0x37e   :  { %v1717_v34 = vadd.f32 %v1951_v21, %v1716_v33 }
 0x37f   :  { %v2020_v58 = vpack.c.bf16 %v1725_v57, %v1722_v62 }
 0x380   :  { %v2015_v0 = vpack.c.bf16 %v1717_v34, %v1714_v63 }
 0x381   :  { %2036 = vst [vmem:[%s3372_s7 + $0x28] sm:$0xff] %v2020_v58  }
 0x382   :  { %2035 = vst [vmem:[%s3372_s7 + $0x20] sm:$0xff] %v2015_v0  }
 0x38a   :  { %v2149_v44 = vpop.f32.mrb[76].mxu1 }
 0x38b   :  { %v1729_v3 = vpop.f32.mrb[77].mxu1  ;;  %v1738_v59 = vadd.f32 %v2149_v44, %v1951_v21 }
 0x38c   :  { %v2150_v4 = vpop.f32.mrb[78].mxu1  ;;  %v1730_v2 = vadd.f32 %v1951_v21, %v1729_v3 }
 0x38d   :  { %v1741_v60 = vadd.f32 %v2150_v4, %v1951_v21  ;;  %v1732_v1 = vpop.f32.mrb[79].mxu1 }
 0x38e   :  { %v1733_v5 = vadd.f32 %v1951_v21, %v1732_v1 }
 0x38f   :  { %v2030_v45 = vpack.c.bf16 %v1741_v60, %v1738_v59 }
 0x390   :  { %v2025_v35 = vpack.c.bf16 %v1733_v5, %v1730_v2 }
 0x391   :  { %2038 = vst [vmem:[%s3372_s7 + $0x38] sm:$0xff] %v2030_v45  }
 0x392   :  { %2037 = vst [vmem:[%s3372_s7 + $0x30] sm:$0xff] %v2025_v35  }

</bundles_post_ra>
